<compile_context>
chip_gen: v5e
topology: v5e:2x2
jax: 0.10.0
libtpu: 0.0.40
codegen_flags: <defaults>
</compile_context>

<pallas_src>
import functools

import jax
import jax.numpy as jnp
from jax.experimental import pallas as pl
from jax.experimental.pallas import tpu as pltpu


def _round_up(x, m):
    return (x + m - 1) // m * m


def mlp_kernel(x_ref, w1_ref, b1_ref, w2_ref, b2_ref, o_ref):
    # fc1: (tb, K) @ (K, H) on the MXU, f32 accumulation.
    h = jnp.dot(x_ref[...], w1_ref[...], preferred_element_type=jnp.float32)
    # Bias add + ReLU epilogue in f32 on the accumulator.
    h = jnp.maximum(h + b1_ref[...], 0.0)
    # fc2: downcast activations to bf16 only right before the second dot.
    out = jnp.dot(h.astype(w2_ref.dtype), w2_ref[...],
                  preferred_element_type=jnp.float32)
    o_ref[...] = (out + b2_ref[...]).astype(o_ref.dtype)


@functools.partial(jax.jit, static_argnames=("block_b",))
def mlp_forward(x, w1, b1, w2, b2, *, block_b=128):
    """relu(x @ w1 + b1) @ w2 + b2 in one fused Pallas kernel.

    x:  (B, K) float32     w1: (K, H)   b1: (H,) or (1, H)
    w2: (H, N)             b2: (N,) or (1, N)
    Returns (B, N) float32.
    """
    B, K = x.shape
    H = w1.shape[1]
    N = w2.shape[1]
    compute_dtype = jnp.bfloat16

    # Lane-dense padding: zero-padding K is math-preserving (extra columns
    # contribute exactly 0); extra output columns are sliced off below.
    K_pad = _round_up(K, 128)
    N_pad = _round_up(N, 128)
    tb = min(block_b, _round_up(B, 8))
    B_pad = _round_up(B, tb)

    xp = jnp.zeros((B_pad, K_pad), compute_dtype).at[:B, :K].set(
        x.astype(compute_dtype))
    w1p = jnp.zeros((K_pad, H), compute_dtype).at[:K, :].set(
        w1.astype(compute_dtype))
    w2p = jnp.zeros((H, N_pad), compute_dtype).at[:, :N].set(
        w2.astype(compute_dtype))
    b1p = b1.reshape(1, H).astype(jnp.float32)
    b2p = jnp.zeros((1, N_pad), jnp.float32).at[:, :N].set(
        b2.reshape(1, N).astype(jnp.float32))

    grid = (B_pad // tb,)

    cost = pl.CostEstimate(
        flops=2 * B_pad * (K_pad * H + H * N_pad),
        transcendentals=0,
        bytes_accessed=(xp.size * 2 + w1p.size * 2 + w2p.size * 2
                        + b1p.size * 4 + b2p.size * 4
                        + B_pad * N_pad * 4),
    )

    out = pl.pallas_call(
        mlp_kernel,
        out_shape=jax.ShapeDtypeStruct((B_pad, N_pad), jnp.float32),
        grid=grid,
        in_specs=[
            # Activations: tiled along the batch grid axis.
            pl.BlockSpec((tb, K_pad), lambda i: (i, 0)),
            # Weights / biases: constant block index -> resident in VMEM
            # across all batch steps (not re-DMA'd per step).
            pl.BlockSpec((K_pad, H), lambda i: (0, 0)),
            pl.BlockSpec((1, H), lambda i: (0, 0)),
            pl.BlockSpec((H, N_pad), lambda i: (0, 0)),
            pl.BlockSpec((1, N_pad), lambda i: (0, 0)),
        ],
        out_specs=pl.BlockSpec((tb, N_pad), lambda i: (i, 0)),
        compiler_params=pltpu.CompilerParams(
            dimension_semantics=("parallel",)),
        cost_estimate=cost,
    )(xp, w1p, b1p, w2p, b2p)

    return out[:B, :N]


def init_params(key, input_size=300, hidden_size=1024, class_num=22,
                dtype=jnp.float32):
    k1, k2, k3, k4 = jax.random.split(key, 4)
    # Deterministic synthetic init, roughly matching PyTorch fan-in scaling.
    s1 = 1.0 / jnp.sqrt(input_size)
    s2 = 1.0 / jnp.sqrt(hidden_size)
    w1 = jax.random.uniform(k1, (input_size, hidden_size), dtype, -s1, s1)
    b1 = jax.random.uniform(k2, (1, hidden_size), dtype, -s1, s1)
    w2 = jax.random.uniform(k3, (hidden_size, class_num), dtype, -s2, s2)
    b2 = jax.random.uniform(k4, (1, class_num), dtype, -s2, s2)
    return w1, b1, w2, b2


if __name__ == "__main__":
    INPUT_SIZE, HIDDEN_SIZE, CLASS_NUM = 300, 1024, 22
    BATCH = 64

    key = jax.random.PRNGKey(0)
    kx, kp = jax.random.split(key)
    x = jax.random.normal(kx, (BATCH, INPUT_SIZE), jnp.float32)
    w1, b1, w2, b2 = init_params(kp, INPUT_SIZE, HIDDEN_SIZE, CLASS_NUM)

    out = mlp_forward(x, w1, b1, w2, b2)
    jax.block_until_ready(out)
    assert out.shape == (BATCH, CLASS_NUM), out.shape

    # Reference with identical numerics (bf16 operands, f32 accumulation).
    xb = x.astype(jnp.bfloat16)
    w1b = w1.astype(jnp.bfloat16)
    w2b = w2.astype(jnp.bfloat16)
    h_ref = jnp.maximum(
        jnp.dot(xb, w1b, preferred_element_type=jnp.float32) + b1, 0.0)
    ref = jnp.dot(h_ref.astype(jnp.bfloat16), w2b,
                  preferred_element_type=jnp.float32) + b2
    assert jnp.allclose(out, ref, atol=1e-2, rtol=1e-2), (
        float(jnp.max(jnp.abs(out - ref))))

    # Loose sanity check vs. pure-f32 math (bf16 weight quantization noise).
    ref_f32 = jnp.maximum(x @ w1 + b1, 0.0) @ w2 + b2
    assert jnp.allclose(out, ref_f32, atol=1e-1, rtol=0.0), (
        float(jnp.max(jnp.abs(out - ref_f32))))

    print("KERNEL_OK")
</pallas_src>

<mosaic_0001>
module attributes {stable_mosaic.version = 11 : i64} {
  func.func @mlp_kernel(%arg0: i32, %arg1: memref<64x384xbf16, #tpu.memory_space<vmem>>, %arg2: memref<384x1024xbf16, #tpu.memory_space<vmem>>, %arg3: memref<1x1024xf32, #tpu.memory_space<vmem>>, %arg4: memref<1024x128xbf16, #tpu.memory_space<vmem>>, %arg5: memref<1x128xf32, #tpu.memory_space<vmem>>, %arg6: memref<64x128xf32, #tpu.memory_space<vmem>>) attributes {dimension_semantics = [#tpu.dimension_semantics<parallel>], iteration_bounds = array<i64: 1>, scalar_prefetch = 0 : i64, scratch_operands = 0 : i64, tpu.core_type = #tpu.core_type<tc>, window_params = [{transform_indices = @transform_0, window_bounds = array<i64: 64, 384>}, {pipeline_mode = #tpu.pipeline_mode<synchronous>, transform_indices = @transform_1, window_bounds = array<i64: 384, 1024>}, {pipeline_mode = #tpu.pipeline_mode<synchronous>, transform_indices = @transform_2, window_bounds = array<i64: 1, 1024>}, {pipeline_mode = #tpu.pipeline_mode<synchronous>, transform_indices = @transform_3, window_bounds = array<i64: 1024, 128>}, {pipeline_mode = #tpu.pipeline_mode<synchronous>, transform_indices = @transform_4, window_bounds = array<i64: 1, 128>}, {transform_indices = @transform_5, window_bounds = array<i64: 64, 128>}]} {
    %c0 = arith.constant 0 : index
    %c0_0 = arith.constant 0 : index
    %0 = vector.load %arg1[%c0, %c0_0] : memref<64x384xbf16, #tpu.memory_space<vmem>>, vector<64x384xbf16>
    %c0_1 = arith.constant 0 : index
    %c0_2 = arith.constant 0 : index
    %1 = vector.load %arg2[%c0_1, %c0_2] : memref<384x1024xbf16, #tpu.memory_space<vmem>>, vector<384x1024xbf16>
    %cst = arith.constant dense<0.000000e+00> : vector<64x1024xf32>
    %2 = tpu.matmul %0, %1, %cst {dimension_numbers = #tpu.dot_dimension_numbers<[1], [0], [0], [1], [0, 0, 1, 1], [], []>} : vector<64x384xbf16>, vector<384x1024xbf16>, vector<64x1024xf32> -> vector<64x1024xf32>
    %c0_3 = arith.constant 0 : index
    %c0_4 = arith.constant 0 : index
    %3 = vector.load %arg3[%c0_3, %c0_4] : memref<1x1024xf32, #tpu.memory_space<vmem>>, vector<1x1024xf32>
    %4 = vector.broadcast %3 : vector<1x1024xf32> to vector<64x1024xf32>
    %5 = arith.addf %2, %4 : vector<64x1024xf32>
    %cst_5 = arith.constant 0.000000e+00 : f32
    %6 = vector.broadcast %cst_5 : f32 to vector<64x1024xf32>
    %7 = arith.maximumf %5, %6 : vector<64x1024xf32>
    %8 = arith.truncf %7 : vector<64x1024xf32> to vector<64x1024xbf16>
    %c0_6 = arith.constant 0 : index
    %c0_7 = arith.constant 0 : index
    %9 = vector.load %arg4[%c0_6, %c0_7] : memref<1024x128xbf16, #tpu.memory_space<vmem>>, vector<1024x128xbf16>
    %cst_8 = arith.constant dense<0.000000e+00> : vector<64x128xf32>
    %10 = tpu.matmul %8, %9, %cst_8 {dimension_numbers = #tpu.dot_dimension_numbers<[1], [0], [0], [1], [0, 0, 1, 1], [], []>} : vector<64x1024xbf16>, vector<1024x128xbf16>, vector<64x128xf32> -> vector<64x128xf32>
    %c0_9 = arith.constant 0 : index
    %c0_10 = arith.constant 0 : index
    %11 = vector.load %arg5[%c0_9, %c0_10] : memref<1x128xf32, #tpu.memory_space<vmem>>, vector<1x128xf32>
    %12 = vector.broadcast %11 : vector<1x128xf32> to vector<64x128xf32>
    %13 = arith.addf %10, %12 : vector<64x128xf32>
    %c0_11 = arith.constant 0 : index
    %c0_12 = arith.constant 0 : index
    %14 = vector.load %arg6[%c0_11, %c0_12] : memref<64x128xf32, #tpu.memory_space<vmem>>, vector<64x128xf32>
    tpu.vector_store %arg6[%c0_11, %c0_12], %13 {strides = array<i32>} : memref<64x128xf32, #tpu.memory_space<vmem>>, vector<64x128xf32>,
    return
  }
  func.func @transform_0(%arg0: i32) -> (i32, i32) {
    %c0_i32 = arith.constant 0 : i32
    %c0_i32_0 = arith.constant 0 : i32
    return %arg0, %c0_i32 : i32, i32
  }
  func.func @transform_1(%arg0: i32) -> (i32, i32) {
    %c0_i32 = arith.constant 0 : i32
    %c0_i32_0 = arith.constant 0 : i32
    %c0_i32_1 = arith.constant 0 : i32
    return %c0_i32, %c0_i32_0 : i32, i32
  }
  func.func @transform_2(%arg0: i32) -> (i32, i32) {
    %c0_i32 = arith.constant 0 : i32
    %c0_i32_0 = arith.constant 0 : i32
    %c0_i32_1 = arith.constant 0 : i32
    return %c0_i32, %c0_i32_0 : i32, i32
  }
  func.func @transform_3(%arg0: i32) -> (i32, i32) {
    %c0_i32 = arith.constant 0 : i32
    %c0_i32_0 = arith.constant 0 : i32
    %c0_i32_1 = arith.constant 0 : i32
    return %c0_i32, %c0_i32_0 : i32, i32
  }
  func.func @transform_4(%arg0: i32) -> (i32, i32) {
    %c0_i32 = arith.constant 0 : i32
    %c0_i32_0 = arith.constant 0 : i32
    %c0_i32_1 = arith.constant 0 : i32
    return %c0_i32, %c0_i32_0 : i32, i32
  }
  func.func @transform_5(%arg0: i32) -> (i32, i32) {
    %c0_i32 = arith.constant 0 : i32
    %c0_i32_0 = arith.constant 0 : i32
    return %arg0, %c0_i32 : i32, i32
  }
}

</mosaic_0001>

<bundles_post_ra>
// kernel: mlp_forward.1
= control target key start
LH: loop header
LB: loop body
LE: loop exit
PB: predicated region body
PF: predicated region fallthrough
CT: control target
= control target key end

     0   :  { %s6102_s1 = inlined_call_operand.vmem [shape: bf16[384,1024], index: 1, kind: input, shape index: {}]   ;;  %s6103_s0 = inlined_call_operand.vmem [shape: bf16[64,384], index: 0, kind: input, shape index: {}]   ;;  %s6104_s2 = inlined_call_operand.vmem [shape: f32[1,1024], index: 2, kind: input, shape index: {}]   ;;  %s6105_s3 = inlined_call_operand.vmem [shape: bf16[1024,128], index: 3, kind: input, shape index: {}]   ;;  %s6106_s4 = inlined_call_operand.vmem [shape: f32[1,128], index: 4, kind: input, shape index: {}]   ;;  %s6107_s5 = inlined_call_operand.vmem [shape: f32[64,128], index: 5, kind: output, shape index: {}]  }
   0x1   :  { %v3096_v0 = vld [vmem:[%s6102_s1 + $0x1c0] sm:$0xf]  ;;  %v3962_v9 = vld [vmem:[%s6102_s1 + $0x1c4] sm:$0xf] }
   0x2   :  { %v3966_v1 = vld [vmem:[%s6102_s1 + $0x1dc] sm:$0xf0]  ;;  %v3098_v10 = vld [vmem:[%s6102_s1 + $0x1e0] sm:$0xf0] }
   0x3   :  { %v3352_v2 = vld [vmem:[%s6102_s1 + $0x3c0] sm:$0xf]  ;;  %v3097_v3 = vor.u32 %v3966_v1, %v3096_v0  ;;  %v3101_v12 = vor.u32 %v3962_v9, %v3098_v10  ;;  %v3954_v20 = vld [vmem:[%s6102_s1 + $0x184] sm:$0xf] }
   0x4   :  { %v4030_v4 = vld [vmem:[%s6102_s1 + $0x3dc] sm:$0xf0]  ;;  %v3066_v22 = vld [vmem:[%s6102_s1 + $0x1a0] sm:$0xf0] }
   0x5   :  { %v3608_v5 = vld [vmem:[%s6102_s1 + $0x5c0] sm:$0xf]  ;;  %v3353_v7 = vor.u32 %v4030_v4, %v3352_v2  ;;  %1270 = vmatpush.bf16.msra.mxu0 %v3097_v3  ;;  %1357 = vmatpush.bf16.msra.mxu3 %v3101_v12  ;;  %v3069_v25 = vor.u32 %v3954_v20, %v3066_v22  ;;  %v3946_v31 = vld [vmem:[%s6102_s1 + $0x144] sm:$0xf] }
   0x6   :  { %v4094_v6 = vld [vmem:[%s6102_s1 + $0x5dc] sm:$0xf0]  ;;  %v3034_v32 = vld [vmem:[%s6102_s1 + $0x160] sm:$0xf0] }
   0x7   :  { %v3609_v8 = vor.u32 %v4094_v6, %v3608_v5  ;;  %v3064_v11 = vld [vmem:[%s6102_s1 + $0x180] sm:$0xf]  ;;  %1299 = vmatpush.bf16.msra.mxu1 %v3353_v7  ;;  %v3037_v38 = vor.u32 %v3946_v31, %v3034_v32  ;;  %v3938_v42 = vld [vmem:[%s6102_s1 + $0x104] sm:$0xf]  ;;  %v3967_v31 = vld [vmem:[%s6102_s1 + $0x1e4] sm:$0xf0] }
   0x8   :  { %v3958_v13 = vld [vmem:[%s6102_s1 + $0x19c] sm:$0xf0]  ;;  %v3002_v43 = vld [vmem:[%s6102_s1 + $0x120] sm:$0xf0] }
   0x9   :  { %v3320_v14 = vld [vmem:[%s6102_s1 + $0x380] sm:$0xf]  ;;  %1328 = vmatpush.bf16.msra.mxu2 %v3609_v8  ;;  %v3065_v16 = vor.u32 %v3958_v13, %v3064_v11  ;;  %1358 = vmatpush.bf16.msra.mxu3 %v3069_v25  ;;  %v3005_v50 = vor.u32 %v3938_v42, %v3002_v43  ;;  %v3930_v54 = vld [vmem:[%s6102_s1 + $0xc4] sm:$0xf] }
   0xa   :  { %v4022_v15 = vld [vmem:[%s6102_s1 + $0x39c] sm:$0xf0]  ;;  %v2970_v55 = vld [vmem:[%s6102_s1 + $0xe0] sm:$0xf0] }
   0xb   :  { %v3321_v17 = vor.u32 %v4022_v15, %v3320_v14  ;;  %v3576_v18 = vld [vmem:[%s6102_s1 + $0x580] sm:$0xf]  ;;  %1271 = vmatpush.bf16.msra.mxu0 %v3065_v16  ;;  %v2973_v62 = vor.u32 %v3930_v54, %v2970_v55  ;;  %v3922_v2 = vld [vmem:[%s6102_s1 + $0x84] sm:$0xf]  ;;  %v4023_v54 = vld [vmem:[%s6102_s1 + $0x3a4] sm:$0xf0] }
   0xc   :  { %v4086_v19 = vld [vmem:[%s6102_s1 + $0x59c] sm:$0xf0]  ;;  %v2938_v3 = vld [vmem:[%s6102_s1 + $0xa0] sm:$0xf0] }
   0xd   :  { %v3577_v21 = vor.u32 %v4086_v19, %v3576_v18  ;;  %v3032_v23 = vld [vmem:[%s6102_s1 + $0x140] sm:$0xf]  ;;  %1300 = vmatpush.bf16.msra.mxu1 %v3321_v17  ;;  %1359 = vmatpush.bf16.msra.mxu3 %v3037_v38  ;;  %v2941_v10 = vor.u32 %v3922_v2, %v2938_v3  ;;  %v3914_v14 = vld [vmem:[%s6102_s1 + $0x44] sm:$0xf]  ;;  %v2826_v38 = vld [vmem:[%s6103_s0 + $0xc] sm:$0xf0] }
   0xe   :  { %v3950_v24 = vld [vmem:[%s6102_s1 + $0x15c] sm:$0xf0]  ;;  %v2906_v15 = vld [vmem:[%s6102_s1 + $0x60] sm:$0xf0]  ;;  %v4015_v2 = vld [vmem:[%s6102_s1 + $0x364] sm:$0xf0] }
   0xf   :  { %v3288_v26 = vld [vmem:[%s6102_s1 + $0x340] sm:$0xf]  ;;  %v3033_v29 = vor.u32 %v3950_v24, %v3032_v23  ;;  %1329 = vmatpush.bf16.msra.mxu2 %v3577_v21  ;;  %v2909_v25 = vor.u32 %v3914_v14, %v2906_v15  ;;  %v4090_v43 = vld [vmem:[%s6102_s1 + $0x5c4] sm:$0xf]  ;;  %v4007_v14 = vld [vmem:[%s6102_s1 + $0x324] sm:$0xf0] }
  0x10   :  { %v4014_v27 = vld [vmem:[%s6102_s1 + $0x35c] sm:$0xf0] }
  0x11   :  { %v3544_v28 = vld [vmem:[%s6102_s1 + $0x540] sm:$0xf]  ;;  %v3289_v33 = vor.u32 %v4014_v27, %v3288_v26  ;;  %1272 = vmatpush.bf16.msra.mxu0 %v3033_v29  ;;  %1360 = vmatpush.bf16.msra.mxu3 %v3005_v50  ;;  %v3906_v26 = vld [vmem:[%s6102_s1 + $0x4] sm:$0xf]  ;;  %v3895_v29 = vld [vmem:[%s6103_s0 + $0x8] sm:$0xf0] }
  0x12   :  { %v4078_v30 = vld [vmem:[%s6102_s1 + $0x55c] sm:$0xf0]  ;;  %v2874_v27 = vld [vmem:[%s6102_s1 + $0x20] sm:$0xf0]  ;;  %v3959_v50 = vld [vmem:[%s6102_s1 + $0x1a4] sm:$0xf0] }
  0x13   :  { %v3545_v34 = vor.u32 %v4078_v30, %v3544_v28  ;;  %v3000_v35 = vld [vmem:[%s6102_s1 + $0x100] sm:$0xf]  ;;  %1301 = vmatpush.bf16.msra.mxu1 %v3289_v33  ;;  %v3104_v30 = vld [vmem:[%s6102_s1 + $0x1c8] sm:$0xf]  ;;  %v3894_v33 = vld [vmem:[%s6103_s0 + $0x4] sm:$0xf] }
  0x14   :  { %v3942_v36 = vld [vmem:[%s6102_s1 + $0x11c] sm:$0xf0]  ;;  %v3105_v42 = vor.u32 %v3967_v31, %v3104_v30  ;;  %v2838_v30 = vld [vmem:[%s6103_s0 + $0x24] sm:$0xf0] }
  0x15   :  { %v3256_v37 = vld [vmem:[%s6102_s1 + $0x300] sm:$0xf]  ;;  %v3001_v44 = vor.u32 %v3942_v36, %v3000_v35  ;;  %1330 = vmatpush.bf16.msra.mxu2 %v3545_v34  ;;  %1361 = vmatpush.bf16.msra.mxu3 %v2973_v62  ;;  %v3360_v34 = vld [vmem:[%s6102_s1 + $0x3c8] sm:$0xf]  ;;  %v3322_v62 = vld [vmem:[%s6102_s1 + $0x3a0] sm:$0xf0] }
  0x16   :  { %v4006_v39 = vld [vmem:[%s6102_s1 + $0x31c] sm:$0xf0]  ;;  %v4031_v35 = vld [vmem:[%s6102_s1 + $0x3e4] sm:$0xf0] }
  0x17   :  { %v3512_v40 = vld [vmem:[%s6102_s1 + $0x500] sm:$0xf]  ;;  %v3257_v45 = vor.u32 %v4006_v39, %v3256_v37  ;;  %1273 = vmatpush.bf16.msra.mxu0 %v3001_v44  ;;  %v2832_v39 = vld [vmem:[%s6103_s0 + $0x8] sm:$0xf]  ;;  %v3610_v44 = vld [vmem:[%s6102_s1 + $0x5e0] sm:$0xf0] }
  0x18   :  { %v4070_v41 = vld [vmem:[%s6102_s1 + $0x51c] sm:$0xf0]  ;;  %v3613_v55 = vor.u32 %v4090_v43, %v3610_v44  ;;  %v3927_v43 = vld [vmem:[%s6102_s1 + $0xa4] sm:$0xf0] }
  0x19   :  { %v3513_v46 = vor.u32 %v4070_v41, %v3512_v40  ;;  %v2968_v47 = vld [vmem:[%s6102_s1 + $0xc0] sm:$0xf]  ;;  %1302 = vmatpush.bf16.msra.mxu1 %v3257_v45  ;;  %1362 = vmatpush.bf16.msra.mxu3 %v2941_v10  ;;  %v3896_v40 = vld [vmem:[%s6103_s0 + $0x10] sm:$0xf0]  ;;  %v2877_v41 = vor.u32 %v3906_v26, %v2874_v27  ;;  %v4026_v45 = vld [vmem:[%s6102_s1 + $0x3c4] sm:$0xf] }
  0x1a   :  { %v3934_v48 = vld [vmem:[%s6102_s1 + $0xdc] sm:$0xf0]  ;;  %v3290_v10 = vld [vmem:[%s6102_s1 + $0x360] sm:$0xf0]  ;;  %v3935_v26 = vld [vmem:[%s6102_s1 + $0xe4] sm:$0xf0] }
  0x1b   :  { %v3224_v49 = vld [vmem:[%s6102_s1 + $0x2c0] sm:$0xf]  ;;  %v2969_v56 = vor.u32 %v3934_v48, %v2968_v47  ;;  %1331 = vmatpush.bf16.msra.mxu2 %v3513_v46  ;;  %v3361_v47 = vor.u32 %v4031_v35, %v3360_v34  ;;  %v3354_v48 = vld [vmem:[%s6102_s1 + $0x3e0] sm:$0xf0]  ;;  %v3897_v27 = vld [vmem:[%s6103_s0 + $0x1c] sm:$0xf] }
  0x1c   :  { %v3998_v51 = vld [vmem:[%s6102_s1 + $0x2dc] sm:$0xf0]  ;;  %v4560_v44 = vor.u32 %v3897_v27, %v2838_v30  ;;  %v4027_v30 = vld [vmem:[%s6102_s1 + $0x3cc] sm:$0xf] }
  0x1d   :  { %v3480_v52 = vld [vmem:[%s6102_s1 + $0x4c0] sm:$0xf]  ;;  %v3225_v57 = vor.u32 %v3998_v51, %v3224_v49  ;;  %1274 = vmatpush.bf16.msra.mxu0 %v2969_v56  ;;  %1363 = vmatpush.bf16.msra.mxu3 %v2909_v25  ;;  %v3072_v49 = vld [vmem:[%s6102_s1 + $0x188] sm:$0xf]  ;;  %v4436_v51 = vor.u32 %v3894_v33, %v2826_v38  ;;  %v3357_v56 = vor.u32 %v4026_v45, %v3354_v48  ;;  %v3994_v38 = vld [vmem:[%s6102_s1 + $0x2c4] sm:$0xf] }
  0x1e   :  { %v4062_v53 = vld [vmem:[%s6102_s1 + $0x4dc] sm:$0xf0]  ;;  %v2976_v25 = vld [vmem:[%s6102_s1 + $0xc8] sm:$0xf] }
  0x1f   :  { %v3481_v58 = vor.u32 %v4062_v53, %v3480_v52  ;;  %v2936_v59 = vld [vmem:[%s6102_s1 + $0x80] sm:$0xf]  ;;  %1303 = vmatpush.bf16.msra.mxu1 %v3225_v57  ;;  %v4438_v52 = vor.u32 %v3896_v40, %v2832_v39  ;;  %v3328_v53 = vld [vmem:[%s6102_s1 + $0x388] sm:$0xf]  ;;  %v3073_v57 = vor.u32 %v3959_v50, %v3072_v49  ;;  %v2977_v35 = vor.u32 %v3935_v26, %v2976_v25 }
  0x20   :  { %v3926_v60 = vld [vmem:[%s6102_s1 + $0x9c] sm:$0xf0]  ;;  %v3991_v48 = vld [vmem:[%s6102_s1 + $0x2a4] sm:$0xf0] }
  0x21   :  { %v3192_v61 = vld [vmem:[%s6102_s1 + $0x280] sm:$0xf]  ;;  %v2937_v4 = vor.u32 %v3926_v60, %v2936_v59  ;;  %1332 = vmatpush.bf16.msra.mxu2 %v3481_v58  ;;  %1364 = vmatpush.bf16.msra.mxu3 %v2877_v41  ;;  %v4082_v58 = vld [vmem:[%s6102_s1 + $0x584] sm:$0xf] }
  0x22   :  { %v3990_v63 = vld [vmem:[%s6102_s1 + $0x29c] sm:$0xf0]  ;;  %v3578_v59 = vld [vmem:[%s6102_s1 + $0x5a0] sm:$0xf0] }
  0x23   :  { %v3448_v0 = vld [vmem:[%s6102_s1 + $0x480] sm:$0xf]  ;;  %v3193_v5 = vor.u32 %v3990_v63, %v3192_v61  ;;  %1275 = vmatpush.bf16.msra.mxu0 %v2937_v4  ;;  %v4018_v60 = vld [vmem:[%s6102_s1 + $0x384] sm:$0xf]  ;;  %v3329_v61 = vor.u32 %v4023_v54, %v3328_v53  ;;  %v3040_v63 = vld [vmem:[%s6102_s1 + $0x148] sm:$0xf]  ;;  %v3581_v3 = vor.u32 %v4082_v58, %v3578_v59 }
  0x24   :  { %v4054_v1 = vld [vmem:[%s6102_s1 + $0x49c] sm:$0xf0]  ;;  %v3325_v4 = vor.u32 %v4018_v60, %v3322_v62  ;;  %v3226_v41 = vld [vmem:[%s6102_s1 + $0x2e0] sm:$0xf0]  ;;  %v2912_v60 = vld [vmem:[%s6102_s1 + $0x48] sm:$0xf] }
  0x25   :  { %v3449_v6 = vor.u32 %v4054_v1, %v3448_v0  ;;  %v2904_v7 = vld [vmem:[%s6102_s1 + $0x40] sm:$0xf]  ;;  %1304 = vmatpush.bf16.msra.mxu1 %v3193_v5  ;;  %1473 = vmatpush.bf16.msrb.mxu3 %v3361_v47  ;;  %v3951_v0 = vld [vmem:[%s6102_s1 + $0x164] sm:$0xf0]  ;;  %v3229_v50 = vor.u32 %v3994_v38, %v3226_v41  ;;  %v4050_v54 = vld [vmem:[%s6102_s1 + $0x484] sm:$0xf] }
  0x26   :  { %v3918_v8 = vld [vmem:[%s6102_s1 + $0x5c] sm:$0xf0]  ;;  %v3296_v1 = vld [vmem:[%s6102_s1 + $0x348] sm:$0xf]  ;;  %v3041_v5 = vor.u32 %v3951_v0, %v3040_v63  ;;  %v3194_v58 = vld [vmem:[%s6102_s1 + $0x2a0] sm:$0xf0] }
  0x27   :  { %v3160_v9 = vld [vmem:[%s6102_s1 + $0x240] sm:$0xf]  ;;  %v2905_v16 = vor.u32 %v3918_v8, %v2904_v7  ;;  %1333 = vmatpush.bf16.msra.mxu2 %v3449_v6  ;;  %v4074_v6 = vld [vmem:[%s6102_s1 + $0x544] sm:$0xf]  ;;  %v3200_v47 = vld [vmem:[%s6102_s1 + $0x288] sm:$0xf] }
  0x28   :  { %v3982_v11 = vld [vmem:[%s6102_s1 + $0x25c] sm:$0xf0]  ;;  %v3546_v7 = vld [vmem:[%s6102_s1 + $0x560] sm:$0xf0]  ;;  %v3168_v62 = vld [vmem:[%s6102_s1 + $0x248] sm:$0xf] }
  0x29   :  { %v3416_v12 = vld [vmem:[%s6102_s1 + $0x440] sm:$0xf]  ;;  %v3161_v20 = vor.u32 %v3982_v11, %v3160_v9  ;;  %1276 = vmatpush.bf16.msra.mxu0 %v2905_v16  ;;  %v4010_v8 = vld [vmem:[%s6102_s1 + $0x344] sm:$0xf]  ;;  %1474 = vmatpush.bf16.msrb.mxu3 %v3329_v61  ;;  %v3297_v9 = vor.u32 %v4015_v2, %v3296_v1  ;;  %v3008_v11 = vld [vmem:[%s6102_s1 + $0x108] sm:$0xf]  ;;  %v3549_v15 = vor.u32 %v4074_v6, %v3546_v7 }
  0x2a   :  { %v4046_v13 = vld [vmem:[%s6102_s1 + $0x45c] sm:$0xf0]  ;;  %v2836_v16 = vld [vmem:[%s6103_s0 + $0x18] sm:$0xf]  ;;  %v3919_v61 = vld [vmem:[%s6102_s1 + $0x64] sm:$0xf0] }
  0x2b   :  { %v2872_v17 = vld [vmem:[%s6102_s1] sm:$0xf]  ;;  %v3417_v21 = vor.u32 %v4046_v13, %v3416_v12  ;;  %1305 = vmatpush.bf16.msra.mxu1 %v3161_v20  ;;  %v3943_v12 = vld [vmem:[%s6102_s1 + $0x124] sm:$0xf0]  ;;  %v4066_v20 = vld [vmem:[%s6102_s1 + $0x504] sm:$0xf]  ;;  %v2913_v0 = vor.u32 %v3919_v61, %v2912_v60 }
  0x2c   :  { %v3910_v18 = vld [vmem:[%s6102_s1 + $0x1c] sm:$0xf0]  ;;  %v3264_v13 = vld [vmem:[%s6102_s1 + $0x308] sm:$0xf]  ;;  %v4042_v2 = vld [vmem:[%s6102_s1 + $0x444] sm:$0xf] }
  0x2d   :  { %v3128_v19 = vld [vmem:[%s6102_s1 + $0x200] sm:$0xf]  ;;  %v2873_v32 = vor.u32 %v3910_v18, %v2872_v17  ;;  %1334 = vmatpush.bf16.msra.mxu2 %v3417_v21  ;;  %v3898_v17 = vld [vmem:[%s6103_s0 + $0x20] sm:$0xf0]  ;;  %v3293_v18 = vor.u32 %v4010_v8, %v3290_v10  ;;  %1475 = vmatpush.bf16.msrb.mxu3 %v3297_v9  ;;  %v3983_v1 = vld [vmem:[%s6102_s1 + $0x264] sm:$0xf0] }
  0x2e   :  { %v3974_v22 = vld [vmem:[%s6102_s1 + $0x21c] sm:$0xf0]  ;;  %v3514_v21 = vld [vmem:[%s6102_s1 + $0x520] sm:$0xf0]  ;;  %v4549_v39 = vor.u32 %v3898_v17, %v2836_v16  ;;  %v2880_v7 = vld [vmem:[%s6102_s1 + $0x8] sm:$0xf] }
  0x2f   :  { %v3384_v23 = vld [vmem:[%s6102_s1 + $0x400] sm:$0xf]  ;;  %v3129_v36 = vor.u32 %v3974_v22, %v3128_v19  ;;  %1277 = vmatpush.bf16.msra.mxu0 %v2873_v32  ;;  %v3009_v19 = vor.u32 %v3943_v12, %v3008_v11  ;;  %v4002_v22 = vld [vmem:[%s6102_s1 + $0x304] sm:$0xf]  ;;  %v3899_v32 = vld [vmem:[%s6103_s0 + $0x28] sm:$0xf0]  ;;  %v3517_v33 = vor.u32 %v4066_v20, %v3514_v21 }
  0x30   :  { %v4038_v24 = vld [vmem:[%s6102_s1 + $0x41c] sm:$0xf0]  ;;  %v3162_v6 = vld [vmem:[%s6102_s1 + $0x260] sm:$0xf0]  ;;  %v3911_v8 = vld [vmem:[%s6102_s1 + $0x24] sm:$0xf0] }
  0x31   :  { %v2824_v28 = vld [vmem:[%s6103_s0] sm:$0xf]  ;;  %v3385_v37 = vor.u32 %v4038_v24, %v3384_v23  ;;  %1306 = vmatpush.bf16.msra.mxu1 %v3129_v36  ;;  %v3265_v23 = vor.u32 %v4007_v14, %v3264_v13  ;;  %v3258_v24 = vld [vmem:[%s6102_s1 + $0x320] sm:$0xf0]  ;;  %v3136_v9 = vld [vmem:[%s6102_s1 + $0x208] sm:$0xf]  ;;  %v2881_v13 = vor.u32 %v3911_v8, %v2880_v7 }
  0x32   :  { %v4425_v46 = vor.u32 %v3895_v29, %v2824_v28  ;;  %v3232_v28 = vld [vmem:[%s6102_s1 + $0x2c8] sm:$0xf]  ;;  %v2844_v31 = vld [vmem:[%s6103_s0 + $0x20] sm:$0xf]  ;;  %v3261_v34 = vor.u32 %v4002_v22, %v3258_v24  ;;  %v4058_v36 = vld [vmem:[%s6102_s1 + $0x4c4] sm:$0xf] }
  0x33   :  { %1335 = vmatpush.bf16.msra.mxu2 %v3385_v37  ;;  %1386 = vmatpush.bf16.msrb.mxu0 %v3357_v56  ;;  %v3999_v29 = vld [vmem:[%s6102_s1 + $0x2e4] sm:$0xf0]  ;;  %v3482_v37 = vld [vmem:[%s6102_s1 + $0x4e0] sm:$0xf0]  ;;  %v4562_v45 = vor.u32 %v3899_v32, %v2844_v31  ;;  %v3201_v56 = vor.u32 %v3991_v48, %v3200_v47  ;;  %v3901_v20 = vld [vmem:[%s6103_s0 + $0x38] sm:$0xf0] }
  0x34   :  { %1278 = vmatmul.bf16.vlgmr.msra.gmra.mxu0 %v4425_v46  ;;  %1307 = vmatmul.bf16.vlgmr.msra.gmra.mxu1 %v4436_v51  ;;  %v3233_v40 = vor.u32 %v3999_v29, %v3232_v28  ;;  %v3485_v49 = vor.u32 %v4058_v36, %v3482_v37  ;;  %v3975_v10 = vld [vmem:[%s6102_s1 + $0x224] sm:$0xf0]  ;;  %v4034_v14 = vld [vmem:[%s6102_s1 + $0x404] sm:$0xf]  ;;  %v3900_v21 = vld [vmem:[%s6103_s0 + $0x34] sm:$0xf] }
  0x35   :  { %1365 = vmatmul.bf16.vlgmr.msra.gmra.mxu3 %v4425_v46  ;;  %1415 = vmatpush.bf16.msrb.mxu1 %v3613_v55  ;;  %v3450_v55 = vld [vmem:[%s6102_s1 + $0x4a0] sm:$0xf0]  ;;  %v3137_v16 = vor.u32 %v3975_v10, %v3136_v9  ;;  %v2850_v22 = vld [vmem:[%s6103_s0 + $0x3c] sm:$0xf0]  ;;  %v3362_v31 = vld [vmem:[%s6102_s1 + $0x3e8] sm:$0xf0] }
  0x36   :  { %1336 = vmatmul.bf16.vlgmr.msra.gmra.mxu2 %v4438_v52  ;;  %1476 = vmatpush.bf16.msrb.mxu3 %v3265_v23  ;;  %v3453_v59 = vor.u32 %v4050_v54, %v3450_v55  ;;  %v3970_v17 = vld [vmem:[%s6102_s1 + $0x204] sm:$0xf]  ;;  %v2856_v23 = vld [vmem:[%s6103_s0 + $0x38] sm:$0xf]  ;;  %v4654_v28 = vor.u32 %v3900_v21, %v2850_v22  ;;  %v4091_v32 = vld [vmem:[%s6102_s1 + $0x5cc] sm:$0xf] }
  0x37   :  { %1444 = vmatpush.bf16.msrb.mxu2 %v3105_v42  ;;  %1387 = vmatpush.bf16.msrb.mxu0 %v3325_v4  ;;  %v2944_v42 = vld [vmem:[%s6102_s1 + $0x88] sm:$0xf]  ;;  %v3169_v4 = vor.u32 %v3983_v1, %v3168_v62  ;;  %v3902_v24 = vld [vmem:[%s6103_s0 + $0x40] sm:$0xf0]  ;;  %v3106_v36 = vld [vmem:[%s6102_s1 + $0x1e8] sm:$0xf0] }
  0x38   :  { %v2945_v53 = vor.u32 %v3927_v43, %v2944_v42  ;;  %v4656_v29 = vor.u32 %v3902_v24, %v2856_v23  ;;  %v4095_v41 = vld [vmem:[%s6102_s1 + $0x5e4] sm:$0xf0]  ;;  %v4019_v42 = vld [vmem:[%s6102_s1 + $0x38c] sm:$0xf]  ;;  %v3904_v61 = vld [vmem:[%s6103_s0 + $0x50] sm:$0xf0] }
  0x39   :  { %1416 = vmatpush.bf16.msrb.mxu1 %v3581_v3  ;;  %v3418_v3 = vld [vmem:[%s6102_s1 + $0x460] sm:$0xf0]  ;;  %v3330_v47 = vld [vmem:[%s6102_s1 + $0x3a8] sm:$0xf0]  ;;  %v2860_v60 = vld [vmem:[%s6103_s0 + $0x48] sm:$0xf] }
  0x3a   :  { %1477 = vmatpush.bf16.msrb.mxu3 %v3233_v40  ;;  %v3421_v11 = vor.u32 %v4042_v2, %v3418_v3  ;;  %v3616_v40 = vld [vmem:[%s6102_s1 + $0x5c8] sm:$0xf]  ;;  %v4083_v48 = vld [vmem:[%s6102_s1 + $0x58c] sm:$0xf]  ;;  %v3905_v1 = vld [vmem:[%s6103_s0 + $0x58] sm:$0xf0]  ;;  %v4728_v2 = vor.u32 %v3904_v61, %v2860_v60 }
  0x3b   :  { %1445 = vmatpush.bf16.msrb.mxu2 %v3073_v57  ;;  %1388 = vmatpush.bf16.msrb.mxu0 %v3293_v18  ;;  %v3986_v57 = vld [vmem:[%s6102_s1 + $0x284] sm:$0xf]  ;;  %v3617_v43 = vor.u32 %v4095_v41, %v3616_v40  ;;  %v3955_v54 = vld [vmem:[%s6102_s1 + $0x18c] sm:$0xf]  ;;  %v4055_v60 = vld [vmem:[%s6102_s1 + $0x4a4] sm:$0xf0] }
  0x3c   :  { %v3197_v63 = vor.u32 %v3986_v57, %v3194_v58  ;;  %v3130_v18 = vld [vmem:[%s6102_s1 + $0x220] sm:$0xf0]  ;;  %v3074_v55 = vld [vmem:[%s6102_s1 + $0x1a8] sm:$0xf0]  ;;  %v4087_v58 = vld [vmem:[%s6102_s1 + $0x5a4] sm:$0xf0] }
  0x3d   :  { %1417 = vmatpush.bf16.msrb.mxu1 %v3549_v15  ;;  %v3386_v15 = vld [vmem:[%s6102_s1 + $0x420] sm:$0xf0]  ;;  %v3133_v26 = vor.u32 %v3970_v17, %v3130_v18  ;;  %v3077_v57 = vor.u32 %v3955_v54, %v3074_v55  ;;  %v3903_v62 = vld [vmem:[%s6103_s0 + $0x4c] sm:$0xf] }
  0x3e   :  { %1478 = vmatpush.bf16.msrb.mxu3 %v3201_v56  ;;  %v3389_v25 = vor.u32 %v4034_v14, %v3386_v15  ;;  %v3584_v56 = vld [vmem:[%s6102_s1 + $0x588] sm:$0xf]  ;;  %v4075_v7 = vld [vmem:[%s6102_s1 + $0x54c] sm:$0xf] }
  0x3f   :  { %1446 = vmatpush.bf16.msrb.mxu2 %v3041_v5  ;;  %1389 = vmatpush.bf16.msrb.mxu0 %v3261_v34  ;;  %v3978_v5 = vld [vmem:[%s6102_s1 + $0x244] sm:$0xf]  ;;  %v3618_v34 = vld [vmem:[%s6102_s1 + $0x5e8] sm:$0xf0]  ;;  %v3552_v14 = vld [vmem:[%s6102_s1 + $0x548] sm:$0xf] }
  0x40   :  { %v3165_v12 = vor.u32 %v3978_v5, %v3162_v6  ;;  %v3621_v37 = vor.u32 %v4091_v32, %v3618_v34  ;;  %v4011_v5 = vld [vmem:[%s6102_s1 + $0x34c] sm:$0xf]  ;;  %v4079_v15 = vld [vmem:[%s6102_s1 + $0x564] sm:$0xf0] }
  0x41   :  { %1418 = vmatpush.bf16.msrb.mxu1 %v3517_v33  ;;  %v3365_v33 = vor.u32 %v4027_v30, %v3362_v31  ;;  %v3298_v6 = vld [vmem:[%s6102_s1 + $0x368] sm:$0xf0]  ;;  %v3553_v17 = vor.u32 %v4079_v15, %v3552_v14  ;;  %v4071_v30 = vld [vmem:[%s6102_s1 + $0x524] sm:$0xf0] }
  0x42   :  { %1479 = vmatpush.bf16.msrb.mxu3 %v3169_v4  ;;  %v3301_v8 = vor.u32 %v4011_v5, %v3298_v6  ;;  %v3554_v9 = vld [vmem:[%s6102_s1 + $0x568] sm:$0xf0] }
  0x43   :  { %1447 = vmatpush.bf16.msrb.mxu2 %v3009_v19  ;;  %1390 = vmatpush.bf16.msrb.mxu0 %v3229_v50  ;;  %v2848_v19 = vld [vmem:[%s6103_s0 + $0x30] sm:$0xf]  ;;  %v3333_v50 = vor.u32 %v4019_v42, %v3330_v47  ;;  %v3947_v10 = vld [vmem:[%s6102_s1 + $0x14c] sm:$0xf]  ;;  %v3488_v42 = vld [vmem:[%s6102_s1 + $0x4c8] sm:$0xf] }
  0x44   :  { %1283 = vmatmul.bf16.gmra.mxu0 %v4549_v39  ;;  %1312 = vmatmul.bf16.gmra.mxu1 %v4560_v44  ;;  %v4652_v27 = vor.u32 %v3901_v20, %v2848_v19  ;;  %v3266_v18 = vld [vmem:[%s6102_s1 + $0x328] sm:$0xf0] }
  0x45   :  { %1370 = vmatmul.bf16.gmra.mxu3 %v4549_v39  ;;  %1419 = vmatpush.bf16.msrb.mxu1 %v3485_v49  ;;  %v3586_v49 = vld [vmem:[%s6102_s1 + $0x5a8] sm:$0xf0] }
  0x46   :  { %1341 = vmatmul.bf16.gmra.mxu2 %v4562_v45  ;;  %1480 = vmatpush.bf16.msrb.mxu3 %v3137_v16  ;;  %v4003_v16 = vld [vmem:[%s6102_s1 + $0x30c] sm:$0xf] }
  0x47   :  { %1448 = vmatpush.bf16.msrb.mxu2 %v2977_v35  ;;  %1391 = vmatpush.bf16.msrb.mxu0 %v3197_v63  ;;  %v3963_v35 = vld [vmem:[%s6102_s1 + $0x1cc] sm:$0xf]  ;;  %v2862_v63 = vld [vmem:[%s6103_s0 + $0x54] sm:$0xf0]  ;;  %v3269_v21 = vor.u32 %v4003_v16, %v3266_v18 }
  0x48   :  { %v3109_v38 = vor.u32 %v3963_v35, %v3106_v36  ;;  %v4730_v3 = vor.u32 %v3903_v62, %v2862_v63  ;;  %v4067_v19 = vld [vmem:[%s6102_s1 + $0x50c] sm:$0xf] }
  0x49   :  { %1420 = vmatpush.bf16.msrb.mxu1 %v3453_v59  ;;  %v3585_v59 = vor.u32 %v4087_v58, %v3584_v56  ;;  %v3522_v20 = vld [vmem:[%s6102_s1 + $0x528] sm:$0xf0]  ;;  %v3456_v58 = vld [vmem:[%s6102_s1 + $0x488] sm:$0xf] }
  0x4a   :  { %1589 = vmatpush.bf16.msra.mxu3 %v3621_v37  ;;  %v3525_v22 = vor.u32 %v4067_v19, %v3522_v20  ;;  %v3939_v23 = vld [vmem:[%s6102_s1 + $0x10c] sm:$0xf]  ;;  %v3457_v61 = vor.u32 %v4055_v60, %v3456_v58  ;;  %v4080_v58 = vld [vmem:[%s6102_s1 + $0x56c] sm:$0xf0] }
  0x4b   :  { %1449 = vmatpush.bf16.msrb.mxu2 %v2945_v53  ;;  %1392 = vmatpush.bf16.msrb.mxu0 %v3165_v12  ;;  %v3589_v53 = vor.u32 %v4083_v48, %v3586_v49  ;;  %v3557_v12 = vor.u32 %v4075_v7, %v3554_v9  ;;  %v3010_v24 = vld [vmem:[%s6102_s1 + $0x128] sm:$0xf0] }
  0x4c   :  { %v3995_v32 = vld [vmem:[%s6102_s1 + $0x2cc] sm:$0xf] }
  0x4d   :  { %1421 = vmatpush.bf16.msrb.mxu1 %v3421_v11  ;;  %v3042_v11 = vld [vmem:[%s6102_s1 + $0x168] sm:$0xf0] }
  0x4e   :  { %1590 = vmatpush.bf16.msra.mxu3 %v3589_v53  ;;  %v4059_v34 = vld [vmem:[%s6102_s1 + $0x4cc] sm:$0xf] }
  0x4f   :  { %1450 = vmatpush.bf16.msrb.mxu2 %v2913_v0  ;;  %1393 = vmatpush.bf16.msrb.mxu0 %v3133_v26  ;;  %v2868_v0 = vld [vmem:[%s6103_s0 + $0x50] sm:$0xf]  ;;  %v3013_v26 = vor.u32 %v3939_v23, %v3010_v24  ;;  %v3490_v36 = vld [vmem:[%s6102_s1 + $0x4e8] sm:$0xf0]  ;;  %v4039_v23 = vld [vmem:[%s6102_s1 + $0x424] sm:$0xf0] }
  0x50   :  { %v4732_v4 = vor.u32 %v3905_v1, %v2868_v0  ;;  %v3931_v37 = vld [vmem:[%s6102_s1 + $0xcc] sm:$0xf]  ;;  %v3493_v40 = vor.u32 %v4059_v34, %v3490_v36  ;;  %v3368_v34 = vld [vmem:[%s6102_s1 + $0x3d0] sm:$0xf] }
  0x51   :  { %1422 = vmatpush.bf16.msrb.mxu1 %v3389_v25  ;;  %v3520_v25 = vld [vmem:[%s6102_s1 + $0x508] sm:$0xf]  ;;  %v3987_v47 = vld [vmem:[%s6102_s1 + $0x28c] sm:$0xf] }
  0x52   :  { %1591 = vmatpush.bf16.msra.mxu3 %v3557_v12  ;;  %v3521_v31 = vor.u32 %v4071_v30, %v3520_v25  ;;  %v3202_v49 = vld [vmem:[%s6102_s1 + $0x2a8] sm:$0xf0]  ;;  %v3624_v25 = vld [vmem:[%s6102_s1 + $0x5d0] sm:$0xf]  ;;  %v3964_v30 = vld [vmem:[%s6102_s1 + $0x1d4] sm:$0xf] }
  0x53   :  { %1451 = vmatpush.bf16.msrb.mxu2 %v2881_v13  ;;  %1502 = vmatpush.bf16.msra.mxu0 %v3617_v43  ;;  %v3045_v13 = vor.u32 %v3947_v10, %v3042_v11  ;;  %v4063_v43 = vld [vmem:[%s6102_s1 + $0x4e4] sm:$0xf0]  ;;  %v3458_v53 = vld [vmem:[%s6102_s1 + $0x4a8] sm:$0xf0]  ;;  %v3205_v54 = vor.u32 %v3987_v47, %v3202_v49  ;;  %v3082_v47 = vld [vmem:[%s6102_s1 + $0x1b0] sm:$0xf0] }
  0x54   :  { %1288 = vmatmul.bf16.gmra.mxu0 %v4652_v27  ;;  %1317 = vmatmul.bf16.gmra.mxu1 %v4654_v28  ;;  %v3489_v48 = vor.u32 %v4063_v43, %v3488_v42  ;;  %v3923_v56 = vld [vmem:[%s6102_s1 + $0x8c] sm:$0xf]  ;;  %v3424_v10 = vld [vmem:[%s6102_s1 + $0x448] sm:$0xf]  ;;  %v4088_v42 = vld [vmem:[%s6102_s1 + $0x5ac] sm:$0xf0] }
  0x55   :  { %1375 = vmatmul.bf16.gmra.mxu3 %v4652_v27  ;;  %1531 = vmatpush.bf16.msra.mxu1 %v3109_v38  ;;  %v2978_v38 = vld [vmem:[%s6102_s1 + $0xe8] sm:$0xf0]  ;;  %v4047_v11 = vld [vmem:[%s6102_s1 + $0x464] sm:$0xf0]  ;;  %v3956_v43 = vld [vmem:[%s6102_s1 + $0x194] sm:$0xf] }
  0x56   :  { %1346 = vmatmul.bf16.gmra.mxu2 %v4656_v29  ;;  %1592 = vmatpush.bf16.msra.mxu3 %v3525_v22  ;;  %v2981_v41 = vor.u32 %v3931_v37, %v2978_v38  ;;  %v3979_v62 = vld [vmem:[%s6102_s1 + $0x24c] sm:$0xf]  ;;  %v3392_v22 = vld [vmem:[%s6102_s1 + $0x408] sm:$0xf]  ;;  %v3112_v37 = vld [vmem:[%s6102_s1 + $0x1d0] sm:$0xf]  ;;  %v3085_v49 = vor.u32 %v3956_v43, %v3082_v47 }
  0x57   :  { %1560 = vmatpush.bf16.msra.mxu2 %v3365_v33  ;;  %1503 = vmatpush.bf16.msra.mxu0 %v3585_v59  ;;  %v3234_v33 = vld [vmem:[%s6102_s1 + $0x2e8] sm:$0xf0]  ;;  %v3393_v24 = vor.u32 %v4039_v23, %v3392_v22  ;;  %v3968_v38 = vld [vmem:[%s6102_s1 + $0x1ec] sm:$0xf0] }
  0x58   :  { %v3237_v35 = vor.u32 %v3995_v32, %v3234_v33  ;;  %v3170_v63 = vld [vmem:[%s6102_s1 + $0x268] sm:$0xf0]  ;;  %v3114_v32 = vld [vmem:[%s6102_s1 + $0x1f0] sm:$0xf0]  ;;  %v3240_v43 = vld [vmem:[%s6102_s1 + $0x2d0] sm:$0xf] }
  0x59   :  { %1532 = vmatpush.bf16.msra.mxu1 %v3077_v57  ;;  %v2946_v57 = vld [vmem:[%s6102_s1 + $0xa8] sm:$0xf0]  ;;  %v3173_v1 = vor.u32 %v3979_v62, %v3170_v63  ;;  %v3117_v33 = vor.u32 %v3964_v30, %v3114_v32  ;;  %v3050_v62 = vld [vmem:[%s6102_s1 + $0x170] sm:$0xf0]  ;;  %v3496_v30 = vld [vmem:[%s6102_s1 + $0x4d0] sm:$0xf] }
  0x5a   :  { %1593 = vmatpush.bf16.msra.mxu3 %v3493_v40  ;;  %v2949_v59 = vor.u32 %v3923_v56, %v2946_v57  ;;  %v4043_v0 = vld [vmem:[%s6102_s1 + $0x44c] sm:$0xf]  ;;  %v3592_v40 = vld [vmem:[%s6102_s1 + $0x590] sm:$0xf]  ;;  %v3932_v32 = vld [vmem:[%s6102_s1 + $0xd4] sm:$0xf] }
  0x5b   :  { %1561 = vmatpush.bf16.msra.mxu2 %v3333_v50  ;;  %1504 = vmatpush.bf16.msra.mxu0 %v3553_v17  ;;  %v4051_v50 = vld [vmem:[%s6102_s1 + $0x48c] sm:$0xf]  ;;  %v3960_v56 = vld [vmem:[%s6102_s1 + $0x1ac] sm:$0xf0] }
  0x5c   :  { %v3461_v55 = vor.u32 %v4051_v50, %v3458_v53  ;;  %v3426_v5 = vld [vmem:[%s6102_s1 + $0x468] sm:$0xf0]  ;;  %v3336_v50 = vld [vmem:[%s6102_s1 + $0x390] sm:$0xf] }
  0x5d   :  { %1533 = vmatpush.bf16.msra.mxu1 %v3045_v13  ;;  %v3915_v6 = vld [vmem:[%s6102_s1 + $0x4c] sm:$0xf]  ;;  %v3425_v13 = vor.u32 %v4047_v11, %v3424_v10  ;;  %v4024_v53 = vld [vmem:[%s6102_s1 + $0x3ac] sm:$0xf0] }
  0x5e   :  { %1594 = vmatpush.bf16.msra.mxu3 %v3461_v55  ;;  %v2914_v7 = vld [vmem:[%s6102_s1 + $0x68] sm:$0xf0]  ;;  %v3337_v55 = vor.u32 %v4024_v53, %v3336_v50  ;;  %v3560_v57 = vld [vmem:[%s6102_s1 + $0x550] sm:$0xf] }
  0x5f   :  { %1562 = vmatpush.bf16.msra.mxu2 %v3301_v8  ;;  %1505 = vmatpush.bf16.msra.mxu0 %v3521_v31  ;;  %v3429_v8 = vor.u32 %v4043_v0, %v3426_v5  ;;  %v2917_v9 = vor.u32 %v3915_v6, %v2914_v7  ;;  %v3971_v12 = vld [vmem:[%s6102_s1 + $0x20c] sm:$0xf]  ;;  %v3561_v60 = vor.u32 %v4080_v58, %v3560_v57  ;;  %v4961_v0 = vld [vmem:[%s6104_s2] sm:$0xff]  ;;  %v4016_v5 = vld [vmem:[%s6102_s1 + $0x36c] sm:$0xf0] }
  0x60   :  { %v3138_v14 = vld [vmem:[%s6102_s1 + $0x228] sm:$0xf0]  ;;  %v3048_v7 = vld [vmem:[%s6102_s1 + $0x150] sm:$0xf]  ;;  %v3924_v57 = vld [vmem:[%s6102_s1 + $0x94] sm:$0xf] }
  0x61   :  { %1534 = vmatpush.bf16.msra.mxu1 %v3013_v26  ;;  %v4035_v15 = vld [vmem:[%s6102_s1 + $0x40c] sm:$0xf]  ;;  %v3141_v17 = vor.u32 %v3971_v12, %v3138_v14  ;;  %v4096_v26 = vld [vmem:[%s6102_s1 + $0x5ec] sm:$0xf0]  ;;  %v3940_v12 = vld [vmem:[%s6102_s1 + $0x114] sm:$0xf] }
  0x62   :  { %v3394_v16 = vld [vmem:[%s6102_s1 + $0x428] sm:$0xf0]  ;;  %1595 = vmatpush.bf16.msra.mxu3 %v3429_v8  ;;  %v3625_v31 = vor.u32 %v4096_v26, %v3624_v25  ;;  %v3952_v8 = vld [vmem:[%s6102_s1 + $0x16c] sm:$0xf0]  ;;  %v4988_v14 = vperm.slane %v4961_v0, 0 }
  0x63   :  { %1563 = vmatpush.bf16.msra.mxu2 %v3269_v21  ;;  %1506 = vmatpush.bf16.msra.mxu0 %v3489_v48  ;;  %v3397_v18 = vor.u32 %v4035_v15, %v3394_v16  ;;  %v3907_v19 = vld [vmem:[%s6102_s1 + $0xc] sm:$0xf]  ;;  %v3593_v48 = vor.u32 %v4088_v42, %v3592_v40  ;;  %v3049_v10 = vor.u32 %v3952_v8, %v3048_v7  ;;  %v4072_v11 = vld [vmem:[%s6102_s1 + $0x52c] sm:$0xf0]  ;;  %v2954_v58 = vld [vmem:[%s6102_s1 + $0xb0] sm:$0xf0] }
  0x64   :  { %1293 = vmatmul.bf16.gmra.mxu0 %v4728_v2  ;;  %1322 = vmatmul.bf16.gmra.mxu1 %v4730_v3  ;;  %v2882_v20 = vld [vmem:[%s6102_s1 + $0x28] sm:$0xf0]  ;;  %v3944_v25 = vld [vmem:[%s6102_s1 + $0x12c] sm:$0xf0] }
  0x65   :  { %1380 = vmatmul.bf16.gmra.mxu3 %v4728_v2  ;;  %1535 = vmatpush.bf16.msra.mxu1 %v2981_v41  ;;  %v2885_v21 = vor.u32 %v3907_v19, %v2882_v20  ;;  %v3113_v41 = vor.u32 %v3968_v38, %v3112_v37  ;;  %v3272_v20 = vld [vmem:[%s6102_s1 + $0x310] sm:$0xf] }
  0x66   :  { %1351 = vmatmul.bf16.gmra.mxu2 %v4732_v4  ;;  %1596 = vmatpush.bf16.msra.mxu3 %v3397_v18  ;;  %v4000_v47 = vld [vmem:[%s6102_s1 + $0x2ec] sm:$0xf0] }
  0x67   :  { %1564 = vmatpush.bf16.msra.mxu2 %v3237_v35  ;;  %1507 = vmatpush.bf16.msra.mxu0 %v3457_v61  ;;  %v4032_v35 = vld [vmem:[%s6102_s1 + $0x3ec] sm:$0xf0]  ;;  %v3948_v61 = vld [vmem:[%s6102_s1 + $0x154] sm:$0xf] }
  0x68   :  { %v3369_v36 = vor.u32 %v4032_v35, %v3368_v34  ;;  %v3053_v63 = vor.u32 %v3948_v61, %v3050_v62  ;;  %v2986_v34 = vld [vmem:[%s6102_s1 + $0xf0] sm:$0xf0]  ;;  %v2984_v50 = vld [vmem:[%s6102_s1 + $0xd0] sm:$0xf] }
  0x69   :  { %1536 = vmatpush.bf16.msra.mxu1 %v2949_v59  ;;  %v3936_v53 = vld [vmem:[%s6102_s1 + $0xec] sm:$0xf0] }
  0x6b   :  { %1565 = vmatpush.bf16.msra.mxu2 %v3205_v54  ;;  %1508 = vmatpush.bf16.msra.mxu0 %v3425_v13  ;;  %v3080_v54 = vld [vmem:[%s6102_s1 + $0x190] sm:$0xf]  ;;  %v3018_v13 = vld [vmem:[%s6102_s1 + $0x130] sm:$0xf0] }
  0x6c   :  { %v3081_v59 = vor.u32 %v3960_v56, %v3080_v54  ;;  %v3021_v16 = vor.u32 %v3940_v12, %v3018_v13  ;;  %v3464_v54 = vld [vmem:[%s6102_s1 + $0x490] sm:$0xf] }
  0x6d   :  { %1537 = vmatpush.bf16.msra.mxu1 %v2917_v9  ;;  %v3528_v9 = vld [vmem:[%s6102_s1 + $0x510] sm:$0xf] }
  0x6e   :  { %v3529_v15 = vor.u32 %v4072_v11, %v3528_v9  ;;  %v4056_v56 = vld [vmem:[%s6102_s1 + $0x4ac] sm:$0xf0] }
  0x6f   :  { %1566 = vmatpush.bf16.msra.mxu2 %v3173_v1  ;;  %1509 = vmatpush.bf16.msra.mxu0 %v3393_v24  ;;  %v3304_v1 = vld [vmem:[%s6102_s1 + $0x350] sm:$0xf] }
  0x70   :  { %v3305_v6 = vor.u32 %v4016_v5, %v3304_v1  ;;  %v3016_v24 = vld [vmem:[%s6102_s1 + $0x110] sm:$0xf] }
  0x71   :  { %1538 = vmatpush.bf16.msra.mxu1 %v2885_v21  ;;  %v4008_v21 = vld [vmem:[%s6102_s1 + $0x32c] sm:$0xf0]  ;;  %v3017_v26 = vor.u32 %v3944_v25, %v3016_v24 }
  0x72   :  { %v3273_v23 = vor.u32 %v4008_v21, %v3272_v20  ;;  %v3208_v9 = vld [vmem:[%s6102_s1 + $0x290] sm:$0xf]  ;;  %v3916_v20 = vld [vmem:[%s6102_s1 + $0x54] sm:$0xf] }
  0x73   :  { %1567 = vmatpush.bf16.msra.mxu2 %v3141_v17  ;;  %v2952_v13 = vld [vmem:[%s6102_s1 + $0x90] sm:$0xf] }
  0x74   :  { %1394 = vmatmul.bf16.vlgmr.msrb.gmra.mxu0 %v4436_v51  ;;  %1423 = vmatmul.bf16.vlgmr.msrb.gmra.mxu1 %v4438_v52 }
  0x75   :  { %1481 = vmatmul.bf16.vlgmr.msrb.gmra.mxu3 %v4436_v51  ;;  %1647 = vmatpush.bf16.msrb.mxu1 %v3369_v36  ;;  %v2989_v36 = vor.u32 %v3932_v32, %v2986_v34  ;;  %v3984_v34 = vld [vmem:[%s6102_s1 + $0x26c] sm:$0xf0] }
  0x76   :  { %1452 = vmatmul.bf16.vlgmr.msrb.gmra.mxu2 %v4425_v46  ;;  %1705 = vmatpush.bf16.msrb.mxu3 %v3117_v33 }
  0x77   :  { %1676 = vmatpush.bf16.msrb.mxu2 %v3625_v31  ;;  %1618 = vmatpush.bf16.msrb.mxu0 %v3113_v41  ;;  %v4064_v31 = vld [vmem:[%s6102_s1 + $0x4ec] sm:$0xf0] }
  0x78   :  { %v3497_v33 = vor.u32 %v4064_v31, %v3496_v30 }
  0x79   :  { %1648 = vmatpush.bf16.msrb.mxu1 %v3337_v55  ;;  %v2985_v55 = vor.u32 %v3936_v53, %v2984_v50 }
  0x7a   :  { %1706 = vmatpush.bf16.msrb.mxu3 %v3085_v49  ;;  %v3241_v49 = vor.u32 %v4000_v47, %v3240_v43  ;;  %v4040_v43 = vld [vmem:[%s6102_s1 + $0x42c] sm:$0xf0]  ;;  %v3908_v47 = vld [vmem:[%s6102_s1 + $0x14] sm:$0xf] }
  0x7b   :  { %1677 = vmatpush.bf16.msrb.mxu2 %v3593_v48  ;;  %1619 = vmatpush.bf16.msrb.mxu0 %v3081_v59  ;;  %v3465_v59 = vor.u32 %v4056_v56, %v3464_v54  ;;  %v3144_v54 = vld [vmem:[%s6102_s1 + $0x210] sm:$0xf] }
  0x7c   :  { %v2888_v56 = vld [vmem:[%s6102_s1 + $0x10] sm:$0xf] }
  0x7d   :  { %1649 = vmatpush.bf16.msrb.mxu1 %v3305_v6 }
  0x7e   :  { %1707 = vmatpush.bf16.msrb.mxu3 %v3053_v63 }
  0x7f   :  { %1678 = vmatpush.bf16.msrb.mxu2 %v3561_v60  ;;  %1620 = vmatpush.bf16.msrb.mxu0 %v3049_v10  ;;  %v2957_v60 = vor.u32 %v3924_v57, %v2954_v58  ;;  %v3992_v10 = vld [vmem:[%s6102_s1 + $0x2ac] sm:$0xf0] }
  0x80   :  { %v3209_v12 = vor.u32 %v3992_v10, %v3208_v9  ;;  %v3120_v10 = vld [vmem:[%s6102_s1 + $0x1d8] sm:$0xf] }
  0x81   :  { %1650 = vmatpush.bf16.msrb.mxu1 %v3273_v23 }
  0x82   :  { %1708 = vmatpush.bf16.msrb.mxu3 %v3021_v16 }
  0x83   :  { %1679 = vmatpush.bf16.msrb.mxu2 %v3529_v15  ;;  %1621 = vmatpush.bf16.msrb.mxu0 %v3017_v26  ;;  %v3928_v15 = vld [vmem:[%s6102_s1 + $0xac] sm:$0xf0] }
  0x84   :  { %1399 = vmatmul.bf16.gmra.mxu0 %v4560_v44  ;;  %1428 = vmatmul.bf16.gmra.mxu1 %v4562_v45 }
  0x85   :  { %1486 = vmatmul.bf16.gmra.mxu3 %v4560_v44  ;;  %1651 = vmatpush.bf16.msrb.mxu1 %v3241_v49 }
  0x86   :  { %1457 = vmatmul.bf16.gmra.mxu2 %v4549_v39  ;;  %1709 = vmatpush.bf16.msrb.mxu3 %v2989_v36 }
  0x87   :  { %1680 = vmatpush.bf16.msrb.mxu2 %v3497_v33  ;;  %1622 = vmatpush.bf16.msrb.mxu0 %v2985_v55  ;;  %v3176_v33 = vld [vmem:[%s6102_s1 + $0x250] sm:$0xf] }
  0x88   :  { %v3177_v36 = vor.u32 %v3984_v34, %v3176_v33  ;;  %v3976_v55 = vld [vmem:[%s6102_s1 + $0x22c] sm:$0xf0]  ;;  %v4028_v33 = vld [vmem:[%s6102_s1 + $0x3d4] sm:$0xf] }
  0x89   :  { %1652 = vmatpush.bf16.msrb.mxu1 %v3209_v12  ;;  %v3376_v12 = vld [vmem:[%s6102_s1 + $0x3d8] sm:$0xf]  ;;  %v3370_v34 = vld [vmem:[%s6102_s1 + $0x3f0] sm:$0xf0] }
  0x8a   :  { %1710 = vmatpush.bf16.msrb.mxu3 %v2957_v60  ;;  %v3145_v60 = vor.u32 %v3976_v55, %v3144_v54 }
  0x8b   :  { %1681 = vmatpush.bf16.msrb.mxu2 %v3465_v59 }
  0x8d   :  { %1653 = vmatpush.bf16.msrb.mxu1 %v3177_v36 }
  0x91   :  { %1654 = vmatpush.bf16.msrb.mxu1 %v3145_v60 }
  0x94   :  { %1404 = vmatmul.bf16.gmra.mxu0 %v4654_v28  ;;  %1433 = vmatmul.bf16.gmra.mxu1 %v4656_v29 }
  0x95   :  { %1491 = vmatmul.bf16.gmra.mxu3 %v4654_v28 }
  0x96   :  { %1462 = vmatmul.bf16.gmra.mxu2 %v4652_v27 }
  0xa4   :  { %1409 = vmatmul.bf16.gmra.mxu0 %v4730_v3  ;;  %1438 = vmatmul.bf16.gmra.mxu1 %v4732_v4 }
  0xa5   :  { %1496 = vmatmul.bf16.gmra.mxu3 %v4730_v3 }
  0xa6   :  { %1467 = vmatmul.bf16.gmra.mxu2 %v4728_v2 }
  0xb1   :  { %v1279_v17 = vpop.f32.mrf.mxu0  ;;  %v1308_v19 = vpop.f32.mrf.mxu1 }
  0xb2   :  { %v1280_v18 = vadd.f32 %v1279_v17, %v4988_v14  ;;  %v2953_v17 = vor.u32 %v3928_v15, %v2952_v13  ;;  %v4033_v15 = vld [vmem:[%s6102_s1 + $0x3f4] sm:$0xf0] }
  0xb4   :  { %v1309_v22 = vadd.f32 %v1308_v19, %v1280_v18  ;;  %1510 = vmatmul.bf16.vlgmr.msra.gmra.mxu0 %v4438_v52  ;;  %1539 = vmatmul.bf16.vlgmr.msra.gmra.mxu1 %v4425_v46  ;;  %v3432_v18 = vld [vmem:[%s6102_s1 + $0x450] sm:$0xf] }
  0xb5   :  { %1597 = vmatmul.bf16.vlgmr.msra.gmra.mxu3 %v4438_v52  ;;  %v4048_v19 = vld [vmem:[%s6102_s1 + $0x46c] sm:$0xf0]  ;;  %1623 = vmatpush.bf16.msrb.mxu0 %v2953_v17 }
  0xb6   :  { %1568 = vmatmul.bf16.vlgmr.msra.gmra.mxu2 %v4436_v51  ;;  %v3433_v21 = vor.u32 %v4048_v19, %v3432_v18  ;;  %v3377_v18 = vor.u32 %v4033_v15, %v3376_v12 }
  0xb8   :  { %v5019_v38 = vpop.f32.mrf.mxu3  ;;  %1682 = vmatpush.bf16.msrb.mxu2 %v3433_v21 }
  0xb9   :  { %v1337_v35 = vpop.f32.mrf.mxu2  ;;  %v1281_v40 = vpop.f32.mrf.mxu0 }
  0xba   :  { %v1338_v37 = vadd.f32 %v1337_v35, %v1309_v22  ;;  %v1282_v41 = vadd.f32 %v1281_v40, %v4988_v14  ;;  %v1310_v42 = vpop.f32.mrf.mxu1  ;;  %v2922_v22 = vld [vmem:[%s6102_s1 + $0x70] sm:$0xf0]  ;;  %v3920_v40 = vld [vmem:[%s6102_s1 + $0x6c] sm:$0xf0] }
  0xbb   :  { %v2925_v24 = vor.u32 %v3916_v20, %v2922_v22 }
  0xbc   :  { %v1311_v48 = vadd.f32 %v1310_v42, %v1282_v41  ;;  %v1966_v7 = vmax.f32 %v1338_v37, 0.0  ;;  %v2920_v37 = vld [vmem:[%s6102_s1 + $0x50] sm:$0xf] }
  0xbd   :  { %1711 = vmatpush.bf16.msrb.mxu3 %v2925_v24  ;;  %v3400_v41 = vld [vmem:[%s6102_s1 + $0x410] sm:$0xf]  ;;  %v2921_v42 = vor.u32 %v3920_v40, %v2920_v37  ;;  %v4092_v24 = vld [vmem:[%s6102_s1 + $0x5d4] sm:$0xf] }
  0xbe   :  { %v3401_v49 = vor.u32 %v4040_v43, %v3400_v41  ;;  %v3373_v41 = vor.u32 %v4028_v33, %v3370_v34  ;;  %v3344_v43 = vld [vmem:[%s6102_s1 + $0x398] sm:$0xf] }
  0xbf   :  { %1624 = vmatpush.bf16.msrb.mxu0 %v2921_v42  ;;  %v3961_v42 = vld [vmem:[%s6102_s1 + $0x1b4] sm:$0xf0] }
  0xc0   :  { %v5046_v63 = vpop.f32.mrf.mxu3  ;;  %1683 = vmatpush.bf16.msrb.mxu2 %v3401_v49  ;;  %v3945_v34 = vld [vmem:[%s6102_s1 + $0x134] sm:$0xf0] }
  0xc1   :  { %v1339_v61 = vpop.f32.mrf.mxu2  ;;  %v1284_v1 = vpop.f32.mrf.mxu0 }
  0xc2   :  { %v1340_v62 = vadd.f32 %v1339_v61, %v1311_v48  ;;  %v1285_v5 = vadd.f32 %v1284_v1, %v4988_v14  ;;  %v1313_v6 = vpop.f32.mrf.mxu1  ;;  %v2890_v48 = vld [vmem:[%s6102_s1 + $0x30] sm:$0xf0]  ;;  %v3912_v61 = vld [vmem:[%s6102_s1 + $0x2c] sm:$0xf0] }
  0xc3   :  { %v2893_v50 = vor.u32 %v3908_v47, %v2890_v48  ;;  %v4025_v47 = vld [vmem:[%s6102_s1 + $0x3b4] sm:$0xf0] }
  0xc4   :  { %v1974_v8 = vmax.f32 %v1340_v62, 0.0  ;;  %v1314_v11 = vadd.f32 %v1313_v6, %v1285_v5  ;;  %1515 = vmatmul.bf16.gmra.mxu0 %v4562_v45  ;;  %1544 = vmatmul.bf16.gmra.mxu1 %v4549_v39  ;;  %v2889_v5 = vor.u32 %v3912_v61, %v2888_v56  ;;  %v3345_v55 = vor.u32 %v4025_v47, %v3344_v43  ;;  %v4084_v56 = vld [vmem:[%s6102_s1 + $0x594] sm:$0xf] }
  0xc5   :  { %1602 = vmatmul.bf16.gmra.mxu3 %v4562_v45 }
  0xc6   :  { %v5062_v16 = vpack.c.bf16 %v1974_v8, %v1966_v7  ;;  %1573 = vmatmul.bf16.gmra.mxu2 %v4560_v44  ;;  %1712 = vmatpush.bf16.msrb.mxu3 %v2893_v50 }
  0xc7   :  { %1625 = vmatpush.bf16.msrb.mxu0 %v2889_v5  ;;  %v3056_v5 = vld [vmem:[%s6102_s1 + $0x158] sm:$0xf] }
  0xc8   :  { %v5079_v26 = vpop.f32.mrf.mxu3 }
  0xc9   :  { %v1342_v23 = vpop.f32.mrf.mxu2  ;;  %v1286_v30 = vpop.f32.mrf.mxu0 }
  0xca   :  { %v1343_v25 = vadd.f32 %v1342_v23, %v1314_v11  ;;  %v1287_v31 = vadd.f32 %v1286_v30, %v4988_v14  ;;  %v1315_v32 = vpop.f32.mrf.mxu1  ;;  %v3969_v11 = vld [vmem:[%s6102_s1 + $0x1f4] sm:$0xf0]  ;;  %1821 = vmatpush.bf16.msra.mxu3 %v3377_v18 }
  0xcb   :  { %v3121_v13 = vor.u32 %v3969_v11, %v3120_v10  ;;  %1734 = vmatpush.bf16.msra.mxu0 %v3373_v41  ;;  %v4017_v10 = vld [vmem:[%s6102_s1 + $0x374] sm:$0xf0] }
  0xcc   :  { %v1316_v35 = vadd.f32 %v1315_v32, %v1287_v31  ;;  %v1982_v6 = vmax.f32 %v1343_v25, 0.0  ;;  %v3626_v25 = vld [vmem:[%s6102_s1 + $0x5f0] sm:$0xf0] }
  0xcd   :  { %1792 = vmatpush.bf16.msra.mxu2 %v3121_v13  ;;  %v3629_v31 = vor.u32 %v4092_v24, %v3626_v25  ;;  %v5209_v24 = vperm.slane %v4961_v0, 1 }
  0xce   :  { %1822 = vmatpush.bf16.msra.mxu3 %v3345_v55 }
  0xcf   :  { %1763 = vmatpush.bf16.msra.mxu1 %v3629_v31  ;;  %v3306_v31 = vld [vmem:[%s6102_s1 + $0x370] sm:$0xf0] }
  0xd0   :  { %v5115_v58 = vpop.f32.mrf.mxu3 }
  0xd1   :  { %v1344_v53 = vpop.f32.mrf.mxu2  ;;  %v1289_v59 = vpop.f32.mrf.mxu0 }
  0xd2   :  { %v1345_v57 = vadd.f32 %v1344_v53, %v1316_v35  ;;  %v1290_v62 = vadd.f32 %v1289_v59, %v4988_v14  ;;  %v1318_v1 = vpop.f32.mrf.mxu1  ;;  %v3088_v35 = vld [vmem:[%s6102_s1 + $0x198] sm:$0xf] }
  0xd3   :  { %v3089_v50 = vor.u32 %v3961_v42, %v3088_v35  ;;  %v3280_v35 = vld [vmem:[%s6102_s1 + $0x318] sm:$0xf] }
  0xd4   :  { %v1990_v7 = vmax.f32 %v1345_v57, 0.0  ;;  %v1319_v8 = vadd.f32 %v1318_v1, %v1290_v62  ;;  %1520 = vmatmul.bf16.gmra.mxu0 %v4656_v29  ;;  %1549 = vmatmul.bf16.gmra.mxu1 %v4652_v27  ;;  %v3594_v57 = vld [vmem:[%s6102_s1 + $0x5b0] sm:$0xf0] }
  0xd5   :  { %1607 = vmatmul.bf16.gmra.mxu3 %v4656_v29  ;;  %1793 = vmatpush.bf16.msra.mxu2 %v3089_v50  ;;  %v3597_v60 = vor.u32 %v4084_v56, %v3594_v57  ;;  %v4020_v62 = vld [vmem:[%s6102_s1 + $0x394] sm:$0xf] }
  0xd6   :  { %1578 = vmatmul.bf16.gmra.mxu2 %v4654_v28  ;;  %v5124_v9 = vpack.c.bf16 %v1990_v7, %v1982_v6  ;;  %v3338_v1 = vld [vmem:[%s6102_s1 + $0x3b0] sm:$0xf0]  ;;  %v3953_v7 = vld [vmem:[%s6102_s1 + $0x174] sm:$0xf0] }
  0xd7   :  { %1764 = vmatpush.bf16.msra.mxu1 %v3597_v60  ;;  %v3341_v6 = vor.u32 %v4020_v62, %v3338_v1  ;;  %v3057_v12 = vor.u32 %v3953_v7, %v3056_v5  ;;  %v4068_v56 = vld [vmem:[%s6102_s1 + $0x514] sm:$0xf]  ;;  %v5243_v60 = vperm.slane %v4961_v0, 2  ;;  %v2992_v7 = vld [vmem:[%s6102_s1 + $0xd8] sm:$0xf] }
  0xd8   :  { %v5139_v20 = vpop.f32.mrf.mxu3  ;;  %v4004_v1 = vld [vmem:[%s6102_s1 + $0x314] sm:$0xf] }
  0xd9   :  { %v1347_v17 = vpop.f32.mrf.mxu2  ;;  %v1291_v21 = vpop.f32.mrf.mxu0  ;;  %1735 = vmatpush.bf16.msra.mxu0 %v3341_v6  ;;  %1794 = vmatpush.bf16.msra.mxu2 %v3057_v12  ;;  %v3274_v5 = vld [vmem:[%s6102_s1 + $0x330] sm:$0xf0] }
  0xda   :  { %v1348_v19 = vadd.f32 %v1347_v17, %v1319_v8  ;;  %v1292_v22 = vadd.f32 %v1291_v21, %v4988_v14  ;;  %v1320_v23 = vpop.f32.mrf.mxu1  ;;  %v3312_v8 = vld [vmem:[%s6102_s1 + $0x358] sm:$0xf]  ;;  %v3277_v6 = vor.u32 %v4004_v1, %v3274_v5 }
  0xdb   :  { %v3313_v13 = vor.u32 %v4017_v10, %v3312_v8  ;;  %v3937_v8 = vld [vmem:[%s6102_s1 + $0xf4] sm:$0xf0] }
  0xdc   :  { %v1321_v30 = vadd.f32 %v1320_v23, %v1292_v22  ;;  %v1998_v53 = vmax.f32 %v1348_v19, 0.0  ;;  %v4076_v22 = vld [vmem:[%s6102_s1 + $0x554] sm:$0xf]  ;;  %v3248_v10 = vld [vmem:[%s6102_s1 + $0x2d8] sm:$0xf] }
  0xdd   :  { %1823 = vmatpush.bf16.msra.mxu3 %v3313_v13  ;;  %v3562_v23 = vld [vmem:[%s6102_s1 + $0x570] sm:$0xf0]  ;;  %v2993_v13 = vor.u32 %v3937_v8, %v2992_v7 }
  0xe0   :  { %v5157_v37 = vpop.f32.mrf.mxu3 }
  0xe1   :  { %v1349_v32 = vpop.f32.mrf.mxu2  ;;  %v1294_v40 = vpop.f32.mrf.mxu0 }
  0xe2   :  { %v1350_v36 = vadd.f32 %v1349_v32, %v1321_v30  ;;  %v1295_v48 = vadd.f32 %v1294_v40, %v4988_v14  ;;  %v1323_v49 = vpop.f32.mrf.mxu1  ;;  %v3565_v30 = vor.u32 %v4076_v22, %v3562_v23  ;;  %v3024_v32 = vld [vmem:[%s6102_s1 + $0x118] sm:$0xf]  ;;  %v1367_v40 = vadd.f32 %v5019_v38, %v5209_v24  ;;  %v3530_v38 = vld [vmem:[%s6102_s1 + $0x530] sm:$0xf0] }
  0xe3   :  { %v3025_v42 = vor.u32 %v3945_v34, %v3024_v32 }
  0xe4   :  { %v2006_v54 = vmax.f32 %v1350_v36, 0.0  ;;  %v1324_v59 = vadd.f32 %v1323_v49, %v1295_v48  ;;  %1525 = vmatmul.bf16.gmra.mxu0 %v4732_v4  ;;  %1554 = vmatmul.bf16.gmra.mxu1 %v4728_v2  ;;  %v4009_v36 = vld [vmem:[%s6102_s1 + $0x334] sm:$0xf0] }
  0xe5   :  { %1612 = vmatmul.bf16.gmra.mxu3 %v4732_v4  ;;  %1765 = vmatpush.bf16.msra.mxu1 %v3565_v30  ;;  %v3281_v43 = vor.u32 %v4009_v36, %v3280_v35  ;;  %v3996_v35 = vld [vmem:[%s6102_s1 + $0x2d4] sm:$0xf] }
  0xe6   :  { %1583 = vmatmul.bf16.gmra.mxu2 %v4730_v3  ;;  %v5178_v61 = vpack.c.bf16 %v2006_v54, %v1998_v53  ;;  %v3242_v36 = vld [vmem:[%s6102_s1 + $0x2f0] sm:$0xf0] }
  0xe7   :  { %1795 = vmatpush.bf16.msra.mxu2 %v3025_v42  ;;  %1824 = vmatpush.bf16.msra.mxu3 %v3281_v43  ;;  %v3929_v42 = vld [vmem:[%s6102_s1 + $0xb4] sm:$0xf0] }
  0xe8   :  { %v5199_v17 = vpop.f32.mrf.mxu3  ;;  %v3216_v43 = vld [vmem:[%s6102_s1 + $0x298] sm:$0xf] }
  0xe9   :  { %v1352_v11 = vpop.f32.mrf.mxu2  ;;  %v1296_v18 = vpop.f32.mrf.mxu0 }
  0xea   :  { %v1353_v15 = vadd.f32 %v1352_v11, %v1324_v59  ;;  %v1297_v19 = vadd.f32 %v1296_v18, %v4988_v14  ;;  %v1325_v21 = vpop.f32.mrf.mxu1  ;;  %v4012_v14 = vld [vmem:[%s6102_s1 + $0x354] sm:$0xf]  ;;  %v3533_v59 = vor.u32 %v4068_v56, %v3530_v38  ;;  %v1369_v11 = vadd.f32 %v5046_v63, %v5209_v24 }
  0xeb   :  { %v3309_v33 = vor.u32 %v4012_v14, %v3306_v31  ;;  %1796 = vmatpush.bf16.msra.mxu2 %v2993_v13  ;;  %v4060_v63 = vld [vmem:[%s6102_s1 + $0x4d4] sm:$0xf]  ;;  %v2928_v13 = vld [vmem:[%s6102_s1 + $0x58] sm:$0xf] }
  0xec   :  { %v1326_v25 = vadd.f32 %v1325_v21, %v1297_v19  ;;  %v2014_v54 = vmax.f32 %v1353_v15, 0.0  ;;  %1766 = vmatpush.bf16.msra.mxu1 %v3533_v59  ;;  %v4001_v15 = vld [vmem:[%s6102_s1 + $0x2f4] sm:$0xf0]  ;;  %v3498_v14 = vld [vmem:[%s6102_s1 + $0x4f0] sm:$0xf0] }
  0xed   :  { %1736 = vmatpush.bf16.msra.mxu0 %v3309_v33  ;;  %v3249_v22 = vor.u32 %v4001_v15, %v3248_v10  ;;  %v3501_v32 = vor.u32 %v4060_v63, %v3498_v14  ;;  %v3988_v10 = vld [vmem:[%s6102_s1 + $0x294] sm:$0xf]  ;;  %v3921_v15 = vld [vmem:[%s6102_s1 + $0x74] sm:$0xf0] }
  0xef   :  { %1825 = vmatpush.bf16.msra.mxu3 %v3249_v22  ;;  %v2929_v22 = vor.u32 %v3921_v15, %v2928_v13  ;;  %v3146_v13 = vld [vmem:[%s6102_s1 + $0x230] sm:$0xf0] }
  0xf0   :  { %v5231_v48 = vpop.f32.mrf.mxu3  ;;  %1767 = vmatpush.bf16.msra.mxu1 %v3501_v32 }
  0xf1   :  { %v1354_v41 = vpop.f32.mrf.mxu2  ;;  %v1395_v49 = vpop.f32.mrf.mxu0  ;;  %1737 = vmatpush.bf16.msra.mxu0 %v3277_v6  ;;  %v3466_v6 = vld [vmem:[%s6102_s1 + $0x4b0] sm:$0xf0] }
  0xf2   :  { %v1355_v47 = vadd.f32 %v1354_v41, %v1326_v25  ;;  %v1396_v50 = vadd.f32 %v1395_v49, %v1367_v40  ;;  %v1424_v53 = vpop.f32.mrf.mxu1  ;;  %v3245_v40 = vor.u32 %v3996_v35, %v3242_v36  ;;  %v2960_v41 = vld [vmem:[%s6102_s1 + $0x98] sm:$0xf]  ;;  %v3434_v35 = vld [vmem:[%s6102_s1 + $0x470] sm:$0xf0] }
  0xf4   :  { %v2022_v55 = vmax.f32 %v1355_v47, 0.0  ;;  %v1425_v57 = vadd.f32 %v1424_v53, %v1396_v50  ;;  %1626 = vmatmul.bf16.vlgmr.msrb.gmra.mxu0 %v4425_v46  ;;  %1655 = vmatmul.bf16.vlgmr.msrb.gmra.mxu1 %v4436_v51  ;;  %v1372_v47 = vadd.f32 %v5079_v26, %v5209_v24  ;;  %v2961_v53 = vor.u32 %v3929_v42, %v2960_v41  ;;  %v4052_v26 = vld [vmem:[%s6102_s1 + $0x494] sm:$0xf] }
  0xf5   :  { %1713 = vmatmul.bf16.vlgmr.msrb.gmra.mxu3 %v4425_v46  ;;  %1738 = vmatpush.bf16.msra.mxu0 %v3245_v40  ;;  %v3469_v8 = vor.u32 %v4052_v26, %v3466_v6  ;;  %v3980_v41 = vld [vmem:[%s6102_s1 + $0x254] sm:$0xf] }
  0xf6   :  { %1684 = vmatmul.bf16.vlgmr.msrb.gmra.mxu2 %v4438_v52  ;;  %v5245_v62 = vpack.c.bf16 %v2022_v55, %v2014_v54  ;;  %v1967_v33 = vmax.f32 %v1425_v57, 0.0  ;;  %v3993_v54 = vld [vmem:[%s6102_s1 + $0x2b4] sm:$0xf0]  ;;  %v3178_v42 = vld [vmem:[%s6102_s1 + $0x270] sm:$0xf0] }
  0xf7   :  { %v3217_v57 = vor.u32 %v3993_v54, %v3216_v43  ;;  %1797 = vmatpush.bf16.msra.mxu2 %v2961_v53  ;;  %1768 = vmatpush.bf16.msra.mxu1 %v3469_v8  ;;  %v3181_v43 = vor.u32 %v3980_v41, %v3178_v42  ;;  %v2896_v53 = vld [vmem:[%s6102_s1 + $0x18] sm:$0xf]  ;;  %v4036_v26 = vld [vmem:[%s6102_s1 + $0x414] sm:$0xf] }
  0xf8   :  { %v1482_v19 = vpop.f32.mrf.mxu3  ;;  %v3913_v54 = vld [vmem:[%s6102_s1 + $0x34] sm:$0xf0]  ;;  %v3402_v6 = vld [vmem:[%s6102_s1 + $0x430] sm:$0xf0] }
  0xf9   :  { %v1453_v12 = vpop.f32.mrf.mxu2  ;;  %v1397_v21 = vpop.f32.mrf.mxu0  ;;  %1826 = vmatpush.bf16.msra.mxu3 %v3217_v57  ;;  %v1377_v57 = vadd.f32 %v5139_v20, %v5209_v24 }
  0xfa   :  { %v1454_v18 = vadd.f32 %v1453_v12, %v5243_v60  ;;  %v1398_v23 = vadd.f32 %v1397_v21, %v1369_v11  ;;  %v1426_v25 = vpop.f32.mrf.mxu1  ;;  %v3210_v11 = vld [vmem:[%s6102_s1 + $0x2b0] sm:$0xf0] }
  0xfb   :  { %v3213_v12 = vor.u32 %v3988_v10, %v3210_v11  ;;  %1798 = vmatpush.bf16.msra.mxu2 %v2929_v22 }
  0xfc   :  { %v5269_v30 = vadd.f32 %v1482_v19, %v1454_v18  ;;  %v1427_v31 = vadd.f32 %v1426_v25, %v1398_v23  ;;  %v3184_v18 = vld [vmem:[%s6102_s1 + $0x258] sm:$0xf]  ;;  %v1374_v19 = vadd.f32 %v5115_v58, %v5209_v24  ;;  %v4044_v58 = vld [vmem:[%s6102_s1 + $0x454] sm:$0xf] }
  0xfd   :  { %v3985_v23 = vld [vmem:[%s6102_s1 + $0x274] sm:$0xf0]  ;;  %1739 = vmatpush.bf16.msra.mxu0 %v3213_v12  ;;  %v3437_v40 = vor.u32 %v4044_v58, %v3434_v35  ;;  %v3405_v12 = vor.u32 %v4036_v26, %v3402_v6  ;;  %v4085_v26 = vld [vmem:[%s6102_s1 + $0x59c] sm:$0xf]  ;;  %v1382_v6 = vadd.f32 %v5199_v17, %v5209_v24 }
  0xfe   :  { %v1975_v34 = vmax.f32 %v1427_v31, 0.0  ;;  %v3185_v31 = vor.u32 %v3985_v23, %v3184_v18  ;;  %v4029_v23 = vld [vmem:[%s6102_s1 + $0x3dc] sm:$0xf] }
  0xff   :  { %1769 = vmatpush.bf16.msra.mxu1 %v3437_v40 }
 0x100   :  { %v5294_v49 = vpack.c.bf16 %v1975_v34, %v1967_v33  ;;  %v1484_v56 = vpop.f32.mrf.mxu3  ;;  %1827 = vmatpush.bf16.msra.mxu3 %v3185_v31  ;;  %v3634_v31 = vld [vmem:[%s6102_s1 + $0x5f8] sm:$0xf0] }
 0x101   :  { %v1455_v50 = vpop.f32.mrf.mxu2  ;;  %v1400_v38 = vpop.f32.mrf.mxu0  ;;  %1740 = vmatpush.bf16.msra.mxu0 %v3181_v43 }
 0x102   :  { %v1456_v55 = vadd.f32 %v1455_v50, %v5243_v60  ;;  %v1401_v59 = vadd.f32 %v1400_v38, %v1372_v47  ;;  %v1429_v1 = vpop.f32.mrf.mxu1  ;;  %v3977_v38 = vld [vmem:[%s6102_s1 + $0x234] sm:$0xf0] }
 0x103   :  { %1770 = vmatpush.bf16.msra.mxu1 %v3405_v12 }
 0x104   :  { %v5300_v5 = vadd.f32 %v1484_v56, %v1456_v55  ;;  %v1430_v7 = vadd.f32 %v1429_v1, %v1401_v59  ;;  %1631 = vmatmul.bf16.gmra.mxu0 %v4549_v39  ;;  %1660 = vmatmul.bf16.gmra.mxu1 %v4560_v44  ;;  %v2897_v55 = vor.u32 %v3913_v54, %v2896_v53  ;;  %v3152_v56 = vld [vmem:[%s6102_s1 + $0x218] sm:$0xf] }
 0x105   :  { %1718 = vmatmul.bf16.gmra.mxu3 %v4549_v39  ;;  %v3153_v1 = vor.u32 %v3977_v38, %v3152_v56  ;;  %v3632_v56 = vld [vmem:[%s6102_s1 + $0x5d8] sm:$0xf] }
 0x106   :  { %1689 = vmatmul.bf16.gmra.mxu2 %v4562_v45  ;;  %v1983_v47 = vmax.f32 %v1430_v7, 0.0  ;;  %v3972_v7 = vld [vmem:[%s6102_s1 + $0x214] sm:$0xf]  ;;  %v4097_v38 = vld [vmem:[%s6102_s1 + $0x5f4] sm:$0xf0] }
 0x107   :  { %1799 = vmatpush.bf16.msra.mxu2 %v2897_v55  ;;  %1828 = vmatpush.bf16.msra.mxu3 %v3153_v1  ;;  %v3346_v1 = vld [vmem:[%s6102_s1 + $0x3b8] sm:$0xf0] }
 0x108   :  { %v1487_v63 = vpop.f32.mrf.mxu3 }
 0x109   :  { %v1458_v21 = vpop.f32.mrf.mxu2  ;;  %v1402_v14 = vpop.f32.mrf.mxu0 }
 0x10a   :  { %v1459_v25 = vadd.f32 %v1458_v21, %v5243_v60  ;;  %v1403_v32 = vadd.f32 %v1402_v14, %v1374_v19  ;;  %v1431_v33 = vpop.f32.mrf.mxu1  ;;  %v3149_v19 = vor.u32 %v3972_v7, %v3146_v13  ;;  %v4093_v14 = vld [vmem:[%s6102_s1 + $0x5dc] sm:$0xf] }
 0x10b   :  { %v3637_v58 = vor.u32 %v4093_v14, %v3634_v31  ;;  %v3600_v14 = vld [vmem:[%s6102_s1 + $0x598] sm:$0xf]  ;;  %v1384_v31 = vadd.f32 %v5231_v48, %v5209_v24  ;;  %v4077_v48 = vld [vmem:[%s6102_s1 + $0x55c] sm:$0xf] }
 0x10c   :  { %v5333_v34 = vadd.f32 %v1487_v63, %v1459_v25  ;;  %v1432_v36 = vadd.f32 %v1431_v33, %v1403_v32  ;;  %1741 = vmatpush.bf16.msra.mxu0 %v3149_v19  ;;  %v3378_v25 = vld [vmem:[%s6102_s1 + $0x3f8] sm:$0xf0]  ;;  %v1379_v32 = vadd.f32 %v5157_v37, %v5209_v24 }
 0x10d   :  { %v3381_v63 = vor.u32 %v4029_v23, %v3378_v25  ;;  %1937 = vmatpush.bf16.msrb.mxu3 %v3637_v58  ;;  %v3122_v37 = vld [vmem:[%s6102_s1 + $0x1f8] sm:$0xf0]  ;;  %v4089_v58 = vld [vmem:[%s6102_s1 + $0x5b4] sm:$0xf0] }
 0x10e   :  { %v1991_v50 = vmax.f32 %v1432_v36, 0.0  ;;  %v3957_v25 = vld [vmem:[%s6102_s1 + $0x19c] sm:$0xf] }
 0x10f   :  { %1908 = vmatpush.bf16.msrb.mxu2 %v3381_v63  ;;  %v3090_v63 = vld [vmem:[%s6102_s1 + $0x1b8] sm:$0xf0] }
 0x110   :  { %v5370_v8 = vpack.c.bf16 %v1991_v50, %v1983_v47  ;;  %v1489_v11 = vpop.f32.mrf.mxu3  ;;  %v3965_v50 = vld [vmem:[%s6102_s1 + $0x1dc] sm:$0xf] }
 0x111   :  { %v1460_v59 = vpop.f32.mrf.mxu2  ;;  %v1405_v20 = vpop.f32.mrf.mxu0  ;;  %v3125_v55 = vor.u32 %v3965_v50, %v3122_v37  ;;  %v3570_v50 = vld [vmem:[%s6102_s1 + $0x578] sm:$0xf0] }
 0x112   :  { %v1461_v10 = vadd.f32 %v1460_v59, %v5243_v60  ;;  %v1406_v15 = vadd.f32 %v1405_v20, %v1377_v57  ;;  %v1434_v18 = vpop.f32.mrf.mxu1  ;;  %v3633_v57 = vor.u32 %v4097_v38, %v3632_v56  ;;  %v4021_v59 = vld [vmem:[%s6102_s1 + $0x39c] sm:$0xf] }
 0x113   :  { %1879 = vmatpush.bf16.msrb.mxu1 %v3125_v55  ;;  %v3949_v38 = vld [vmem:[%s6102_s1 + $0x15c] sm:$0xf] }
 0x114   :  { %v5376_v21 = vadd.f32 %v1489_v11, %v1461_v10  ;;  %v1435_v22 = vadd.f32 %v1434_v18, %v1406_v15  ;;  %1636 = vmatmul.bf16.gmra.mxu0 %v4652_v27  ;;  %1665 = vmatmul.bf16.gmra.mxu1 %v4654_v28  ;;  %v3349_v10 = vor.u32 %v4021_v59, %v3346_v1  ;;  %v3602_v11 = vld [vmem:[%s6102_s1 + $0x5b8] sm:$0xf0]  ;;  %v3568_v59 = vld [vmem:[%s6102_s1 + $0x558] sm:$0xf] }
 0x115   :  { %1723 = vmatmul.bf16.gmra.mxu3 %v4652_v27  ;;  %1850 = vmatpush.bf16.msrb.mxu0 %v3633_v57  ;;  %v3605_v18 = vor.u32 %v4085_v26, %v3602_v11  ;;  %v3058_v57 = vld [vmem:[%s6102_s1 + $0x178] sm:$0xf0] }
 0x116   :  { %1694 = vmatmul.bf16.gmra.mxu2 %v4656_v29  ;;  %v1999_v53 = vmax.f32 %v1435_v22, 0.0 }
 0x117   :  { %1909 = vmatpush.bf16.msrb.mxu2 %v3349_v10  ;;  %1938 = vmatpush.bf16.msrb.mxu3 %v3605_v18  ;;  %v4005_v10 = vld [vmem:[%s6102_s1 + $0x31c] sm:$0xf] }
 0x118   :  { %v1492_v36 = vpop.f32.mrf.mxu3 }
 0x119   :  { %v1463_v33 = vpop.f32.mrf.mxu2  ;;  %v1407_v40 = vpop.f32.mrf.mxu0 }
 0x11a   :  { %v1464_v35 = vadd.f32 %v1463_v33, %v5243_v60  ;;  %v1408_v41 = vadd.f32 %v1407_v40, %v1379_v32  ;;  %v1436_v42 = vpop.f32.mrf.mxu1  ;;  %v3093_v33 = vor.u32 %v3957_v25, %v3090_v63 }
 0x11c   :  { %v5397_v43 = vadd.f32 %v1492_v36, %v1464_v35  ;;  %v1437_v47 = vadd.f32 %v1436_v42, %v1408_v41  ;;  %v4013_v35 = vld [vmem:[%s6102_s1 + $0x35c] sm:$0xf]  ;;  %1880 = vmatpush.bf16.msrb.mxu1 %v3093_v33 }
 0x11d   :  { %v3314_v36 = vld [vmem:[%s6102_s1 + $0x378] sm:$0xf0] }
 0x11e   :  { %v2007_v54 = vmax.f32 %v1437_v47, 0.0  ;;  %v3601_v47 = vor.u32 %v4089_v58, %v3600_v14  ;;  %v3317_v24 = vor.u32 %v4013_v35, %v3314_v36 }
 0x120   :  { %v5425_v20 = vpack.c.bf16 %v2007_v54, %v1999_v53  ;;  %v1494_v13 = vpop.f32.mrf.mxu3  ;;  %v3573_v54 = vor.u32 %v4077_v48, %v3570_v50  ;;  %1851 = vmatpush.bf16.msrb.mxu0 %v3601_v47  ;;  %1910 = vmatpush.bf16.msrb.mxu2 %v3317_v24  ;;  %v4061_v48 = vld [vmem:[%s6102_s1 + $0x4dc] sm:$0xf] }
 0x121   :  { %v1465_v7 = vpop.f32.mrf.mxu2  ;;  %v1410_v15 = vpop.f32.mrf.mxu0  ;;  %v3506_v50 = vld [vmem:[%s6102_s1 + $0x4f8] sm:$0xf0] }
 0x122   :  { %v1466_v12 = vadd.f32 %v1465_v7, %v5243_v60  ;;  %v1411_v19 = vadd.f32 %v1410_v15, %v1382_v6  ;;  %v1439_v22 = vpop.f32.mrf.mxu1  ;;  %1939 = vmatpush.bf16.msrb.mxu3 %v3573_v54  ;;  %v3061_v6 = vor.u32 %v3949_v38, %v3058_v57  ;;  %v4081_v7 = vld [vmem:[%s6102_s1 + $0x574] sm:$0xf0]  ;;  %v3538_v15 = vld [vmem:[%s6102_s1 + $0x538] sm:$0xf0] }
 0x123   :  { %v3569_v11 = vor.u32 %v4081_v7, %v3568_v59  ;;  %v3933_v7 = vld [vmem:[%s6102_s1 + $0xdc] sm:$0xf] }
 0x124   :  { %v5428_v23 = vadd.f32 %v1494_v13, %v1466_v12  ;;  %v1440_v17 = vadd.f32 %v1439_v22, %v1411_v19  ;;  %1641 = vmatmul.bf16.gmra.mxu0 %v4728_v2  ;;  %1670 = vmatmul.bf16.gmra.mxu1 %v4730_v3  ;;  %v3282_v12 = vld [vmem:[%s6102_s1 + $0x338] sm:$0xf0] }
 0x125   :  { %1728 = vmatmul.bf16.gmra.mxu3 %v4728_v2  ;;  %v4069_v13 = vld [vmem:[%s6102_s1 + $0x51c] sm:$0xf]  ;;  %1881 = vmatpush.bf16.msrb.mxu1 %v3061_v6  ;;  %v3285_v19 = vor.u32 %v4005_v10, %v3282_v12 }
 0x126   :  { %1699 = vmatmul.bf16.gmra.mxu2 %v4732_v4  ;;  %v2015_v1 = vmax.f32 %v1440_v17, 0.0  ;;  %v3541_v22 = vor.u32 %v4069_v13, %v3538_v15  ;;  %1852 = vmatpush.bf16.msrb.mxu0 %v3569_v11  ;;  %v2994_v10 = vld [vmem:[%s6102_s1 + $0xf8] sm:$0xf0]  ;;  %v4065_v13 = vld [vmem:[%s6102_s1 + $0x4f4] sm:$0xf0] }
 0x127   :  { %1911 = vmatpush.bf16.msrb.mxu2 %v3285_v19  ;;  %v2997_v12 = vor.u32 %v3933_v7, %v2994_v10  ;;  %v3989_v15 = vld [vmem:[%s6102_s1 + $0x29c] sm:$0xf] }
 0x128   :  { %v1497_v41 = vpop.f32.mrf.mxu3  ;;  %1940 = vmatpush.bf16.msrb.mxu3 %v3541_v22  ;;  %v3218_v22 = vld [vmem:[%s6102_s1 + $0x2b8] sm:$0xf0] }
 0x129   :  { %v1468_v32 = vpop.f32.mrf.mxu2  ;;  %v1412_v42 = vpop.f32.mrf.mxu0 }
 0x12a   :  { %v1469_v40 = vadd.f32 %v1468_v32, %v5243_v60  ;;  %v1413_v37 = vadd.f32 %v1412_v42, %v1384_v31  ;;  %v1441_v53 = vpop.f32.mrf.mxu1  ;;  %v5491_v31 = vperm.slane %v4961_v0, 3  ;;  %v3941_v0 = vld [vmem:[%s6102_s1 + $0x11c] sm:$0xf] }
 0x12b   :  { %v3250_v42 = vld [vmem:[%s6102_s1 + $0x2f8] sm:$0xf0] }
 0x12c   :  { %v5461_v55 = vadd.f32 %v1497_v41, %v1469_v40  ;;  %v1442_v56 = vadd.f32 %v1441_v53, %v1413_v37  ;;  %v4073_v40 = vld [vmem:[%s6102_s1 + $0x534] sm:$0xf0]  ;;  %v3997_v41 = vld [vmem:[%s6102_s1 + $0x2dc] sm:$0xf]  ;;  %v3509_v53 = vor.u32 %v4061_v48, %v3506_v50 }
 0x12d   :  { %v3253_v24 = vor.u32 %v3997_v41, %v3250_v42  ;;  %v3472_v50 = vld [vmem:[%s6102_s1 + $0x498] sm:$0xf] }
 0x12e   :  { %v2023_v26 = vmax.f32 %v1442_v56, 0.0  ;;  %1941 = vmatpush.bf16.msrb.mxu3 %v3509_v53  ;;  %v3981_v53 = vld [vmem:[%s6102_s1 + $0x25c] sm:$0xf] }
 0x12f   :  { %1912 = vmatpush.bf16.msrb.mxu2 %v3253_v24  ;;  %v3925_v24 = vld [vmem:[%s6102_s1 + $0x9c] sm:$0xf] }
 0x130   :  { %v5487_v17 = vpack.c.bf16 %v2023_v26, %v2015_v1  ;;  %v1499_v63 = vpop.f32.mrf.mxu3 }
 0x131   :  { %v1470_v18 = vpop.f32.mrf.mxu2  ;;  %v1511_v14 = vpop.f32.mrf.mxu0 }
 0x132   :  { %v1471_v25 = vadd.f32 %v1470_v18, %v5243_v60  ;;  %v1512_v32 = vadd.f32 %v1511_v14, %v5269_v30  ;;  %v1540_v33 = vpop.f32.mrf.mxu1  ;;  %v3026_v60 = vld [vmem:[%s6102_s1 + $0x138] sm:$0xf0]  ;;  %v3536_v30 = vld [vmem:[%s6102_s1 + $0x518] sm:$0xf] }
 0x133   :  { %v1541_v35 = vadd.f32 %v1540_v33, %v5491_v31  ;;  %v3029_v36 = vor.u32 %v3941_v0, %v3026_v60  ;;  %v3537_v47 = vor.u32 %v4073_v40, %v3536_v30 }
 0x134   :  { %v5494_v58 = vadd.f32 %v1499_v63, %v1471_v25  ;;  %1742 = vmatmul.bf16.vlgmr.msra.gmra.mxu0 %v4436_v51  ;;  %1771 = vmatmul.bf16.vlgmr.msra.gmra.mxu1 %v4438_v52  ;;  %v1968_v26 = vmax.f32 %v1512_v32, 0.0  ;;  %v4053_v25 = vld [vmem:[%s6102_s1 + $0x49c] sm:$0xf]  ;;  %v3221_v32 = vor.u32 %v3989_v15, %v3218_v22 }
 0x135   :  { %1829 = vmatmul.bf16.vlgmr.msra.gmra.mxu3 %v4436_v51  ;;  %1882 = vmatpush.bf16.msrb.mxu1 %v3029_v36  ;;  %v3474_v63 = vld [vmem:[%s6102_s1 + $0x4b8] sm:$0xf0] }
 0x136   :  { %1800 = vmatmul.bf16.vlgmr.msra.gmra.mxu2 %v4425_v46  ;;  %1853 = vmatpush.bf16.msrb.mxu0 %v3537_v47  ;;  %v3477_v33 = vor.u32 %v4053_v25, %v3474_v63  ;;  %v3917_v22 = vld [vmem:[%s6102_s1 + $0x5c] sm:$0xf] }
 0x137   :  { %1913 = vmatpush.bf16.msrb.mxu2 %v3221_v32  ;;  %v2930_v25 = vld [vmem:[%s6102_s1 + $0x78] sm:$0xf0] }
 0x138   :  { %v1598_v56 = vpop.f32.mrf.mxu3  ;;  %1942 = vmatpush.bf16.msrb.mxu3 %v3477_v33  ;;  %v2933_v63 = vor.u32 %v3917_v22, %v2930_v25  ;;  %v3973_v33 = vld [vmem:[%s6102_s1 + $0x21c] sm:$0xf] }
 0x139   :  { %v1569_v37 = vpop.f32.mrf.mxu2  ;;  %v1513_v38 = vpop.f32.mrf.mxu0  ;;  %1883 = vmatpush.bf16.msrb.mxu1 %v2997_v12 }
 0x13a   :  { %v1570_v54 = vadd.f32 %v1569_v37, %v1541_v35  ;;  %v1514_v57 = vadd.f32 %v1513_v38, %v5300_v5  ;;  %v1542_v59 = vpop.f32.mrf.mxu1  ;;  %v3504_v5 = vld [vmem:[%s6102_s1 + $0x4d8] sm:$0xf]  ;;  %v3186_v38 = vld [vmem:[%s6102_s1 + $0x278] sm:$0xf0] }
 0x13b   :  { %v1543_v18 = vadd.f32 %v1542_v59, %v5491_v31  ;;  %v3505_v19 = vor.u32 %v4065_v13, %v3504_v5  ;;  %v4057_v37 = vld [vmem:[%s6102_s1 + $0x4b4] sm:$0xf0]  ;;  %v3442_v59 = vld [vmem:[%s6102_s1 + $0x478] sm:$0xf0] }
 0x13c   :  { %v1599_v1 = vadd.f32 %v1598_v56, %v1570_v54  ;;  %v1976_v6 = vmax.f32 %v1514_v57, 0.0  ;;  %v3473_v56 = vor.u32 %v4057_v37, %v3472_v50  ;;  %v4045_v57 = vld [vmem:[%s6102_s1 + $0x45c] sm:$0xf] }
 0x13d   :  { %1854 = vmatpush.bf16.msrb.mxu0 %v3505_v19 }
 0x13e   :  { %v5532_v11 = vpack.c.bf16 %v1976_v6, %v1968_v26  ;;  %v1969_v41 = vmax.f32 %v1599_v1, 0.0  ;;  %v3189_v26 = vor.u32 %v3981_v53, %v3186_v38  ;;  %v3445_v6 = vor.u32 %v4045_v57, %v3442_v59 }
 0x140   :  { %v1600_v0 = vpop.f32.mrf.mxu3  ;;  %1914 = vmatpush.bf16.msrb.mxu2 %v3189_v26  ;;  %1943 = vmatpush.bf16.msrb.mxu3 %v3445_v6 }
 0x141   :  { %v1571_v14 = vpop.f32.mrf.mxu2  ;;  %v1516_v60 = vpop.f32.mrf.mxu0  ;;  %1855 = vmatpush.bf16.msrb.mxu0 %v3473_v56  ;;  %v4041_v56 = vld [vmem:[%s6102_s1 + $0x434] sm:$0xf0] }
 0x142   :  { %v1572_v35 = vadd.f32 %v1571_v14, %v1543_v18  ;;  %v1517_v30 = vadd.f32 %v1516_v60, %v5333_v34  ;;  %v1545_v36 = vpop.f32.mrf.mxu1  ;;  %v2962_v34 = vld [vmem:[%s6102_s1 + $0xb8] sm:$0xf0]  ;;  %v3440_v14 = vld [vmem:[%s6102_s1 + $0x458] sm:$0xf] }
 0x143   :  { %v1546_v47 = vadd.f32 %v1545_v36, %v5491_v31  ;;  %v2965_v48 = vor.u32 %v3925_v24, %v2962_v34  ;;  %v2898_v24 = vld [vmem:[%s6102_s1 + $0x38] sm:$0xf0]  ;;  %v3408_v34 = vld [vmem:[%s6102_s1 + $0x418] sm:$0xf] }
 0x144   :  { %v1601_v40 = vadd.f32 %v1600_v0, %v1572_v35  ;;  %1747 = vmatmul.bf16.gmra.mxu0 %v4560_v44  ;;  %1776 = vmatmul.bf16.gmra.mxu1 %v4562_v45  ;;  %v1984_v18 = vmax.f32 %v1517_v30, 0.0  ;;  %v3154_v35 = vld [vmem:[%s6102_s1 + $0x238] sm:$0xf0]  ;;  %v3409_v59 = vor.u32 %v4041_v56, %v3408_v34 }
 0x145   :  { %1834 = vmatmul.bf16.gmra.mxu3 %v4560_v44  ;;  %1884 = vmatpush.bf16.msrb.mxu1 %v2965_v48  ;;  %v4037_v0 = vld [vmem:[%s6102_s1 + $0x41c] sm:$0xf]  ;;  %v3157_v36 = vor.u32 %v3973_v33, %v3154_v35 }
 0x146   :  { %v1977_v42 = vmax.f32 %v1601_v40, 0.0  ;;  %1805 = vmatmul.bf16.gmra.mxu2 %v4549_v39  ;;  %v3410_v40 = vld [vmem:[%s6102_s1 + $0x438] sm:$0xf0] }
 0x147   :  { %1915 = vmatpush.bf16.msrb.mxu2 %v3157_v36  ;;  %v4105_v56 = vld [vmem:[%s6105_s3 + $0x38] sm:$0xff] }
 0x148   :  { %v5574_v54 = vpack.c.bf16 %v1977_v42, %v1969_v41  ;;  %v1603_v10 = vpop.f32.mrf.mxu3  ;;  %v3413_v42 = vor.u32 %v4037_v0, %v3410_v40 }
 0x149   :  { %v1574_v1 = vpop.f32.mrf.mxu2  ;;  %v1518_v12 = vpop.f32.mrf.mxu0  ;;  %1885 = vmatpush.bf16.msrb.mxu1 %v2933_v63 }
 0x14a   :  { %v1575_v7 = vadd.f32 %v1574_v1, %v1546_v47  ;;  %v1519_v5 = vadd.f32 %v1518_v12, %v5376_v21  ;;  %v1547_v13 = vpop.f32.mrf.mxu1  ;;  %v4049_v21 = vld [vmem:[%s6102_s1 + $0x474] sm:$0xf0]  ;;  %v3909_v47 = vld [vmem:[%s6102_s1 + $0x1c] sm:$0xf]  ;;  %1944 = vmatpush.bf16.msrb.mxu3 %v3413_v42 }
 0x14b   :  { %v3441_v32 = vor.u32 %v4049_v21, %v3440_v14  ;;  %v1548_v30 = vadd.f32 %v1547_v13, %v5491_v31  ;;  %v2901_v53 = vor.u32 %v3909_v47, %v2898_v24  ;;  %v4121_v42 = vld [vmem:[%s6105_s3 + $0xb8] sm:$0xff] }
 0x14c   :  { %v1604_v15 = vadd.f32 %v1603_v10, %v1575_v7  ;;  %v1992_v19 = vmax.f32 %v1519_v5, 0.0  ;;  %2636 = vmatpush.bf16.msra.mxu2 %v4121_v42 }
 0x14d   :  { %1856 = vmatpush.bf16.msrb.mxu0 %v3441_v32  ;;  %1886 = vmatpush.bf16.msrb.mxu1 %v2901_v53 }
 0x14e   :  { %v5607_v60 = vpack.c.bf16 %v1992_v19, %v1984_v18  ;;  %v1985_v26 = vmax.f32 %v1604_v15, 0.0 }
 0x150   :  { %v1605_v50 = vpop.f32.mrf.mxu3 }
 0x151   :  { %v1576_v41 = vpop.f32.mrf.mxu2  ;;  %v1521_v37 = vpop.f32.mrf.mxu0  ;;  %1857 = vmatpush.bf16.msrb.mxu0 %v3409_v59 }
 0x152   :  { %v1577_v48 = vadd.f32 %v1576_v41, %v1548_v30  ;;  %v1522_v38 = vadd.f32 %v1521_v37, %v5397_v43  ;;  %v1550_v57 = vpop.f32.mrf.mxu1 }
 0x153   :  { %v1551_v7 = vadd.f32 %v1550_v57, %v5491_v31 }
 0x154   :  { %v1606_v1 = vadd.f32 %v1605_v50, %v1577_v48  ;;  %1752 = vmatmul.bf16.gmra.mxu0 %v4654_v28  ;;  %1781 = vmatmul.bf16.gmra.mxu1 %v4656_v29  ;;  %v2000_v22 = vmax.f32 %v1522_v38, 0.0  ;;  %v4129_v38 = vld [vmem:[%s6105_s3 + $0xf8] sm:$0xff] }
 0x155   :  { %1839 = vmatmul.bf16.gmra.mxu3 %v4654_v28  ;;  %2578 = vmatpush.bf16.msra.mxu0 %v4105_v56  ;;  %v4126_v56 = vld [vmem:[%s6105_s3 + $0xe0] sm:$0xff] }
 0x156   :  { %v1993_v6 = vmax.f32 %v1606_v1, 0.0  ;;  %1810 = vmatmul.bf16.gmra.mxu2 %v4652_v27  ;;  %v4113_v1 = vld [vmem:[%s6105_s3 + $0x78] sm:$0xff]  ;;  %2665 = vmatpush.bf16.msra.mxu3 %v4129_v38  ;;  %v4110_v38 = vld [vmem:[%s6105_s3 + $0x60] sm:$0xff] }
 0x157   :  { %2607 = vmatpush.bf16.msra.mxu1 %v4113_v1 }
 0x158   :  { %v5631_v10 = vpack.c.bf16 %v1993_v6, %v1985_v26  ;;  %v1608_v5 = vpop.f32.mrf.mxu3  ;;  %v5664_v26 = vld [vmem:[%s6104_s2] sm:$0xff] }
 0x159   :  { %v1579_v43 = vpop.f32.mrf.mxu2  ;;  %v1523_v13 = vpop.f32.mrf.mxu0  ;;  %v5667_v6 = vperm.slane %v5664_v26, 4 }
 0x15a   :  { %v1580_v12 = vadd.f32 %v1579_v43, %v1551_v7  ;;  %v1524_v18 = vadd.f32 %v1523_v13, %v5428_v23  ;;  %v1552_v19 = vpop.f32.mrf.mxu1 }
 0x15b   :  { %v1553_v14 = vadd.f32 %v1552_v19, %v5491_v31 }
 0x15c   :  { %v1609_v15 = vadd.f32 %v1608_v5, %v1580_v12  ;;  %v2008_v25 = vmax.f32 %v1524_v18, 0.0 }
 0x15e   :  { %v5634_v63 = vpack.c.bf16 %v2008_v25, %v2000_v22  ;;  %v2001_v40 = vmax.f32 %v1609_v15, 0.0  ;;  %v4104_v25 = vld [vmem:[%s6105_s3 + $0x30] sm:$0xff] }
 0x15f   :  { %2579 = vmatpush.bf16.msra.mxu0 %v4104_v25  ;;  %v4100_v25 = vld [vmem:[%s6105_s3 + $0x10] sm:$0xff] }
 0x160   :  { %v1610_v33 = vpop.f32.mrf.mxu3 }
 0x161   :  { %v1581_v21 = vpop.f32.mrf.mxu2  ;;  %v1526_v35 = vpop.f32.mrf.mxu0 }
 0x162   :  { %v1582_v32 = vadd.f32 %v1581_v21, %v1553_v14  ;;  %v1527_v0 = vadd.f32 %v1526_v35, %v5461_v55  ;;  %v1555_v30 = vpop.f32.mrf.mxu1  ;;  %v4128_v14 = vld [vmem:[%s6105_s3 + $0xf0] sm:$0xff]  ;;  %v4119_v35 = vld [vmem:[%s6105_s3 + $0xa8] sm:$0xff] }
 0x163   :  { %v1556_v41 = vadd.f32 %v1555_v30, %v5491_v31  ;;  %2666 = vmatpush.bf16.msra.mxu3 %v4128_v14  ;;  %v4116_v14 = vld [vmem:[%s6105_s3 + $0x90] sm:$0xff] }
 0x164   :  { %v1611_v36 = vadd.f32 %v1610_v33, %v1582_v32  ;;  %1757 = vmatmul.bf16.gmra.mxu0 %v4730_v3  ;;  %1786 = vmatmul.bf16.gmra.mxu1 %v4732_v4  ;;  %v2016_v57 = vmax.f32 %v1527_v0, 0.0 }
 0x165   :  { %1844 = vmatmul.bf16.gmra.mxu3 %v4730_v3 }
 0x166   :  { %v2009_v23 = vmax.f32 %v1611_v36, 0.0  ;;  %1815 = vmatmul.bf16.gmra.mxu2 %v4728_v2 }
 0x168   :  { %v5646_v47 = vpack.c.bf16 %v2009_v23, %v2001_v40  ;;  %v1613_v34 = vpop.f32.mrf.mxu3 }
 0x169   :  { %v1584_v55 = vpop.f32.mrf.mxu2  ;;  %v1528_v48 = vpop.f32.mrf.mxu0 }
 0x16a   :  { %v1585_v24 = vadd.f32 %v1584_v55, %v1556_v41  ;;  %v1529_v50 = vadd.f32 %v1528_v48, %v5494_v58  ;;  %v1557_v37 = vpop.f32.mrf.mxu1  ;;  %v4120_v58 = vld [vmem:[%s6105_s3 + $0xb0] sm:$0xff]  ;;  %v4127_v41 = vld [vmem:[%s6105_s3 + $0xe8] sm:$0xff] }
 0x16b   :  { %2637 = vmatpush.bf16.msra.mxu2 %v4120_v58  ;;  %v1558_v43 = vadd.f32 %v1557_v37, %v5491_v31  ;;  %v4112_v31 = vld [vmem:[%s6105_s3 + $0x70] sm:$0xff]  ;;  %v4111_v55 = vld [vmem:[%s6105_s3 + $0x68] sm:$0xff]  ;;  %2667 = vmatpush.bf16.msra.mxu3 %v4127_v41 }
 0x16c   :  { %v1614_v53 = vadd.f32 %v1613_v34, %v1585_v24  ;;  %v2024_v59 = vmax.f32 %v1529_v50, 0.0  ;;  %2608 = vmatpush.bf16.msra.mxu1 %v4112_v31  ;;  %v4118_v24 = vld [vmem:[%s6105_s3 + $0xa0] sm:$0xff] }
 0x16e   :  { %v5669_v7 = vpack.c.bf16 %v2024_v59, %v2016_v57  ;;  %v2017_v32 = vmax.f32 %v1614_v53, 0.0  ;;  %v4102_v53 = vld [vmem:[%s6105_s3 + $0x20] sm:$0xff] }
 0x16f   :  { %2638 = vmatpush.bf16.msra.mxu2 %v4119_v35  ;;  %2668 = vmatpush.bf16.msra.mxu3 %v4126_v56  ;;  %v4099_v35 = vld [vmem:[%s6105_s3 + $0x8] sm:$0xff]  ;;  %v4122_v56 = vld [vmem:[%s6105_s3 + $0xc0] sm:$0xff] }
 0x170   :  { %v1615_v13 = vpop.f32.mrf.mxu3  ;;  %2609 = vmatpush.bf16.msra.mxu1 %v4111_v55  ;;  %v4106_v55 = vld [vmem:[%s6105_s3 + $0x40] sm:$0xff] }
 0x171   :  { %v1586_v12 = vpop.f32.mrf.mxu2  ;;  %v1627_v18 = vpop.f32.mrf.mxu0 }
 0x172   :  { %v1587_v5 = vadd.f32 %v1586_v12, %v1558_v43  ;;  %v1628_v19 = vadd.f32 %v1627_v18, %v5667_v6  ;;  %v1656_v15 = vpop.f32.mrf.mxu1  ;;  %v4117_v18 = vld [vmem:[%s6105_s3 + $0x98] sm:$0xff] }
 0x173   :  { %2639 = vmatpush.bf16.msra.mxu2 %v4118_v24  ;;  %v4114_v24 = vld [vmem:[%s6105_s3 + $0x80] sm:$0xff] }
 0x174   :  { %v1616_v22 = vadd.f32 %v1615_v13, %v1587_v5  ;;  %v1657_v21 = vadd.f32 %v1656_v15, %v1628_v19  ;;  %1858 = vmatmul.bf16.vlgmr.msrb.gmra.mxu0 %v4438_v52  ;;  %1887 = vmatmul.bf16.vlgmr.msrb.gmra.mxu1 %v4425_v46  ;;  %v4101_v5 = vld [vmem:[%s6105_s3 + $0x18] sm:$0xff] }
 0x175   :  { %1945 = vmatmul.bf16.vlgmr.msrb.gmra.mxu3 %v4438_v52  ;;  %v4103_v52 = vld [vmem:[%s6105_s3 + $0x28] sm:$0xff]  ;;  %2610 = vmatpush.bf16.msra.mxu1 %v4110_v38  ;;  %v4109_v13 = vld [vmem:[%s6105_s3 + $0x58] sm:$0xff] }
 0x176   :  { %v2025_v33 = vmax.f32 %v1616_v22, 0.0  ;;  %1916 = vmatmul.bf16.vlgmr.msrb.gmra.mxu2 %v4436_v51  ;;  %2580 = vmatpush.bf16.msra.mxu0 %v4103_v52 }
 0x177   :  { %2640 = vmatpush.bf16.msra.mxu2 %v4117_v18 }
 0x178   :  { %v5689_v0 = vpack.c.bf16 %v2025_v33, %v2017_v32  ;;  %v5691_v40 = vpop.f32.mrf.mxu3  ;;  %v4124_v32 = vld [vmem:[%s6105_s3 + $0xd0] sm:$0xff] }
 0x179   :  { %v1685_v30 = vpop.f32.mrf.mxu2  ;;  %v1629_v23 = vpop.f32.mrf.mxu0  ;;  %2611 = vmatpush.bf16.msra.mxu1 %v4109_v13 }
 0x17a   :  { %v1686_v36 = vadd.f32 %v1685_v30, %v1657_v21  ;;  %v1630_v46 = vadd.f32 %v1629_v23, %v5667_v6  ;;  %v1658_v51 = vpop.f32.mrf.mxu1  ;;  %2581 = vmatpush.bf16.msra.mxu0 %v4102_v53  ;;  %v4107_v30 = vld [vmem:[%s6105_s3 + $0x48] sm:$0xff] }
 0x17b   :  { %2641 = vmatpush.bf16.msra.mxu2 %v4116_v14  ;;  %v4123_v23 = vld [vmem:[%s6105_s3 + $0xc8] sm:$0xff] }
 0x17c   :  { %v1659_v42 = vadd.f32 %v1658_v51, %v1630_v46  ;;  %v1970_v1 = vmax.f32 %v1686_v36, 0.0  ;;  %v4115_v36 = vld [vmem:[%s6105_s3 + $0x88] sm:$0xff] }
 0x17e   :  { %2582 = vmatpush.bf16.msra.mxu0 %v4101_v5 }
 0x17f   :  { %2642 = vmatpush.bf16.msra.mxu2 %v4115_v36 }
 0x180   :  { %v5706_v50 = vpop.f32.mrf.mxu3 }
 0x181   :  { %v1687_v34 = vpop.f32.mrf.mxu2  ;;  %v1632_v37 = vpop.f32.mrf.mxu0 }
 0x182   :  { %v1688_v48 = vadd.f32 %v1687_v34, %v1659_v42  ;;  %v1633_v57 = vadd.f32 %v1632_v37, %v5667_v6  ;;  %v1661_v59 = vpop.f32.mrf.mxu1  ;;  %2583 = vmatpush.bf16.msra.mxu0 %v4100_v25  ;;  %v4098_v42 = vld [vmem:[%s6105_s3] sm:$0xff] }
 0x183   :  { %2643 = vmatpush.bf16.msra.mxu2 %v4114_v24 }
 0x184   :  { %v1978_v58 = vmax.f32 %v1688_v48, 0.0  ;;  %v1662_v43 = vadd.f32 %v1661_v59, %v1633_v57  ;;  %1863 = vmatmul.bf16.gmra.mxu0 %v4562_v45  ;;  %1892 = vmatmul.bf16.gmra.mxu1 %v4549_v39  ;;  %v4125_v39 = vld [vmem:[%s6105_s3 + $0xd8] sm:$0xff] }
 0x185   :  { %1950 = vmatmul.bf16.gmra.mxu3 %v4562_v45  ;;  %v4108_v45 = vld [vmem:[%s6105_s3 + $0x50] sm:$0xff] }
 0x186   :  { %v5719_v12 = vpack.c.bf16 %v1978_v58, %v1970_v1  ;;  %1921 = vmatmul.bf16.gmra.mxu2 %v4560_v44  ;;  %2669 = vmatpush.bf16.msra.mxu3 %v4125_v39 }
 0x187   :  { %2612 = vmatpush.bf16.msra.mxu1 %v4108_v45  ;;  %2584 = vmatpush.bf16.msra.mxu0 %v4099_v35 }
 0x188   :  { %v5736_v15 = vpop.f32.mrf.mxu3 }
 0x189   :  { %v1690_v44 = vpop.f32.mrf.mxu2  ;;  %v1634_v22 = vpop.f32.mrf.mxu0 }
 0x18a   :  { %v1691_v19 = vadd.f32 %v1690_v44, %v1662_v43  ;;  %v1635_v21 = vadd.f32 %v1634_v22, %v5667_v6  ;;  %v1663_v31 = vpop.f32.mrf.mxu1  ;;  %2670 = vmatpush.bf16.msra.mxu3 %v4124_v32 }
 0x18b   :  { %2613 = vmatpush.bf16.msra.mxu1 %v4107_v30  ;;  %2585 = vmatpush.bf16.msra.mxu0 %v4098_v42 }
 0x18c   :  { %v1664_v33 = vadd.f32 %v1663_v31, %v1635_v21  ;;  %v1986_v37 = vmax.f32 %v1691_v19, 0.0  ;;  %v4153_v21 = vld [vmem:[%s6105_s3 + $0x1b8] sm:$0xff] }
 0x18d   :  { %2752 = vmatpush.bf16.msrb.mxu2 %v4153_v21 }
 0x18e   :  { %2671 = vmatpush.bf16.msra.mxu3 %v4123_v23  ;;  %v4145_v23 = vld [vmem:[%s6105_s3 + $0x178] sm:$0xff] }
 0x18f   :  { %2614 = vmatpush.bf16.msra.mxu1 %v4106_v55 }
 0x190   :  { %v5763_v52 = vpop.f32.mrf.mxu3 }
 0x191   :  { %v1692_v46 = vpop.f32.mrf.mxu2  ;;  %v1637_v41 = vpop.f32.mrf.mxu0 }
 0x192   :  { %v1693_v51 = vadd.f32 %v1692_v46, %v1664_v33  ;;  %v1638_v34 = vadd.f32 %v1637_v41, %v5667_v6  ;;  %v1666_v48 = vpop.f32.mrf.mxu1  ;;  %2672 = vmatpush.bf16.msra.mxu3 %v4122_v56  ;;  %v5815_v46 = vperm.slane %v5664_v26, 5 }
 0x193   :  { %2723 = vmatpush.bf16.msrb.mxu1 %v4145_v23 }
 0x194   :  { %v1994_v53 = vmax.f32 %v1693_v51, 0.0  ;;  %v1667_v38 = vadd.f32 %v1666_v48, %v1638_v34  ;;  %1868 = vmatmul.bf16.gmra.mxu0 %v4656_v29  ;;  %1897 = vmatmul.bf16.gmra.mxu1 %v4652_v27  ;;  %v1715_v56 = vadd.f32 %v5691_v40, %v5815_v46  ;;  %v4151_v40 = vld [vmem:[%s6105_s3 + $0x1a8] sm:$0xff] }
 0x195   :  { %1955 = vmatmul.bf16.gmra.mxu3 %v4656_v29 }
 0x196   :  { %1926 = vmatmul.bf16.gmra.mxu2 %v4654_v28  ;;  %v5781_v57 = vpack.c.bf16 %v1994_v53, %v1986_v37  ;;  %v4136_v37 = vld [vmem:[%s6105_s3 + $0x130] sm:$0xff] }
 0x197   :  { %v4160_v53 = vld [vmem:[%s6105_s3 + $0x1f0] sm:$0xff] }
 0x198   :  { %v5784_v58 = vpop.f32.mrf.mxu3 }
 0x199   :  { %v1695_v59 = vpop.f32.mrf.mxu2  ;;  %v1639_v43 = vpop.f32.mrf.mxu0 }
 0x19a   :  { %v1696_v1 = vadd.f32 %v1695_v59, %v1667_v38  ;;  %v1640_v5 = vadd.f32 %v1639_v43, %v5667_v6  ;;  %v1668_v13 = vpop.f32.mrf.mxu1 }
 0x19c   :  { %v1669_v18 = vadd.f32 %v1668_v13, %v1640_v5  ;;  %v2002_v25 = vmax.f32 %v1696_v1, 0.0  ;;  %v4144_v1 = vld [vmem:[%s6105_s3 + $0x170] sm:$0xff] }
 0x19d   :  { %2724 = vmatpush.bf16.msrb.mxu1 %v4144_v1 }
 0x1a0   :  { %v5787_v19 = vpop.f32.mrf.mxu3 }
 0x1a1   :  { %v1697_v39 = vpop.f32.mrf.mxu2  ;;  %v1642_v27 = vpop.f32.mrf.mxu0 }
 0x1a2   :  { %v1698_v44 = vadd.f32 %v1697_v39, %v1669_v18  ;;  %v1643_v28 = vadd.f32 %v1642_v27, %v5667_v6  ;;  %v1671_v22 = vpop.f32.mrf.mxu1  ;;  %v4135_v18 = vld [vmem:[%s6105_s3 + $0x128] sm:$0xff] }
 0x1a3   :  { %v4159_v39 = vld [vmem:[%s6105_s3 + $0x1e8] sm:$0xff] }
 0x1a4   :  { %v2010_v29 = vmax.f32 %v1698_v44, 0.0  ;;  %v1672_v45 = vadd.f32 %v1671_v22, %v1643_v28  ;;  %1873 = vmatmul.bf16.gmra.mxu0 %v4732_v4  ;;  %1902 = vmatmul.bf16.gmra.mxu1 %v4728_v2  ;;  %v4137_v2 = vld [vmem:[%s6105_s3 + $0x138] sm:$0xff]  ;;  %v4150_v22 = vld [vmem:[%s6105_s3 + $0x1a0] sm:$0xff] }
 0x1a5   :  { %1960 = vmatmul.bf16.gmra.mxu3 %v4732_v4  ;;  %2694 = vmatpush.bf16.msrb.mxu0 %v4137_v2  ;;  %v4133_v2 = vld [vmem:[%s6105_s3 + $0x118] sm:$0xff] }
 0x1a6   :  { %1931 = vmatmul.bf16.gmra.mxu2 %v4730_v3  ;;  %v5793_v14 = vpack.c.bf16 %v2010_v29, %v2002_v25  ;;  %v4161_v3 = vld [vmem:[%s6105_s3 + $0x1f8] sm:$0xff] }
 0x1a7   :  { %2781 = vmatpush.bf16.msrb.mxu3 %v4161_v3  ;;  %v4141_v3 = vld [vmem:[%s6105_s3 + $0x158] sm:$0xff] }
 0x1a8   :  { %v5799_v33 = vpop.f32.mrf.mxu3 }
 0x1a9   :  { %v1700_v31 = vpop.f32.mrf.mxu2  ;;  %v1644_v35 = vpop.f32.mrf.mxu0  ;;  %2695 = vmatpush.bf16.msrb.mxu0 %v4136_v37 }
 0x1aa   :  { %v1701_v32 = vadd.f32 %v1700_v31, %v1672_v45  ;;  %v1645_v30 = vadd.f32 %v1644_v35, %v5667_v6  ;;  %v1673_v36 = vpop.f32.mrf.mxu1  ;;  %v4152_v6 = vld [vmem:[%s6105_s3 + $0x1b0] sm:$0xff]  ;;  %v4134_v31 = vld [vmem:[%s6105_s3 + $0x120] sm:$0xff] }
 0x1ab   :  { %2753 = vmatpush.bf16.msrb.mxu2 %v4152_v6  ;;  %2782 = vmatpush.bf16.msrb.mxu3 %v4160_v53  ;;  %v4140_v6 = vld [vmem:[%s6105_s3 + $0x150] sm:$0xff] }
 0x1ac   :  { %v1674_v4 = vadd.f32 %v1673_v36, %v1645_v30  ;;  %v2018_v34 = vmax.f32 %v1701_v32, 0.0  ;;  %v4142_v32 = vld [vmem:[%s6105_s3 + $0x160] sm:$0xff]  ;;  %v1720_v36 = vadd.f32 %v5736_v15, %v5815_v46  ;;  %v4149_v15 = vld [vmem:[%s6105_s3 + $0x198] sm:$0xff] }
 0x1ad   :  { %2696 = vmatpush.bf16.msrb.mxu0 %v4135_v18  ;;  %v4158_v30 = vld [vmem:[%s6105_s3 + $0x1e0] sm:$0xff]  ;;  %v1725_v18 = vadd.f32 %v5784_v58, %v5815_v46 }
 0x1af   :  { %2754 = vmatpush.bf16.msrb.mxu2 %v4151_v40  ;;  %2783 = vmatpush.bf16.msrb.mxu3 %v4159_v39  ;;  %v4147_v39 = vld [vmem:[%s6105_s3 + $0x188] sm:$0xff] }
 0x1b0   :  { %v5817_v42 = vpop.f32.mrf.mxu3 }
 0x1b1   :  { %v1702_v51 = vpop.f32.mrf.mxu2  ;;  %v1743_v55 = vpop.f32.mrf.mxu0  ;;  %2697 = vmatpush.bf16.msrb.mxu0 %v4134_v31 }
 0x1b2   :  { %v1703_v41 = vadd.f32 %v1702_v51, %v1674_v4  ;;  %v1772_v24 = vpop.f32.mrf.mxu1  ;;  %v1744_v59 = vadd.f32 %v1743_v55, %v1715_v56  ;;  %v4148_v56 = vld [vmem:[%s6105_s3 + $0x190] sm:$0xff] }
 0x1b3   :  { %2755 = vmatpush.bf16.msrb.mxu2 %v4150_v22  ;;  %2784 = vmatpush.bf16.msrb.mxu3 %v4158_v30 }
 0x1b4   :  { %v2026_v48 = vmax.f32 %v1703_v41, 0.0  ;;  %2586 = vmatmul.bf16.vlgmr.msra.gmra.mxu0 %v5062_v16  ;;  %2615 = vmatmul.bf16.vlgmr.msra.gmra.mxu1 %v5294_v49  ;;  %v1717_v16 = vadd.f32 %v5706_v50, %v5815_v46  ;;  %v1773_v43 = vadd.f32 %v1772_v24, %v1744_v59  ;;  %v4143_v50 = vld [vmem:[%s6105_s3 + $0x168] sm:$0xff] }
 0x1b5   :  { %2673 = vmatmul.bf16.vlgmr.msra.gmra.mxu3 %v5574_v54  ;;  %2725 = vmatpush.bf16.msrb.mxu1 %v4143_v50  ;;  %v1727_v50 = vadd.f32 %v5787_v19, %v5815_v46 }
 0x1b6   :  { %2644 = vmatmul.bf16.vlgmr.msra.gmra.mxu2 %v5532_v11  ;;  %v5830_v38 = vpack.c.bf16 %v2026_v48, %v2018_v34  ;;  %v1971_v27 = vmax.f32 %v1773_v43, 0.0  ;;  %2698 = vmatpush.bf16.msrb.mxu0 %v4133_v2  ;;  %v4131_v34 = vld [vmem:[%s6105_s3 + $0x108] sm:$0xff]  ;;  %v4138_v43 = vld [vmem:[%s6105_s3 + $0x140] sm:$0xff] }
 0x1b7   :  { %2756 = vmatpush.bf16.msrb.mxu2 %v4149_v15  ;;  %v4139_v48 = vld [vmem:[%s6105_s3 + $0x148] sm:$0xff] }
 0x1b8   :  { %v5843_v11 = vpop.f32.mrf.mxu3 }
 0x1b9   :  { %v5841_v49 = vpop.f32.mrf.mxu2  ;;  %v1745_v54 = vpop.f32.mrf.mxu0  ;;  %2726 = vmatpush.bf16.msrb.mxu1 %v4142_v32 }
 0x1ba   :  { %v1746_v5 = vadd.f32 %v1745_v54, %v1717_v16  ;;  %v1774_v13 = vpop.f32.mrf.mxu1  ;;  %v4130_v54 = vld [vmem:[%s6105_s3 + $0x100] sm:$0xff] }
 0x1bb   :  { %2757 = vmatpush.bf16.msrb.mxu2 %v4148_v56 }
 0x1bc   :  { %v1775_v44 = vadd.f32 %v1774_v13, %v1746_v5  ;;  %v4156_v13 = vld [vmem:[%s6105_s3 + $0x1d0] sm:$0xff] }
 0x1bd   :  { %2727 = vmatpush.bf16.msrb.mxu1 %v4141_v3  ;;  %v1730_v3 = vadd.f32 %v5799_v33, %v5815_v46 }
 0x1be   :  { %v1979_v28 = vmax.f32 %v1775_v44, 0.0 }
 0x1bf   :  { %2758 = vmatpush.bf16.msrb.mxu2 %v4147_v39 }
 0x1c0   :  { %v5857_v25 = vpack.c.bf16 %v1979_v28, %v1971_v27  ;;  %v5861_v45 = vpop.f32.mrf.mxu3 }
 0x1c1   :  { %v5859_v29 = vpop.f32.mrf.mxu2  ;;  %v1748_v21 = vpop.f32.mrf.mxu0  ;;  %2728 = vmatpush.bf16.msrb.mxu1 %v4140_v6 }
 0x1c2   :  { %v1777_v35 = vpop.f32.mrf.mxu1  ;;  %v1749_v4 = vadd.f32 %v1748_v21, %v1720_v36  ;;  %v4155_v21 = vld [vmem:[%s6105_s3 + $0x1c8] sm:$0xff] }
 0x1c4   :  { %2591 = vmatmul.bf16.gmra.mxu0 %v5124_v9  ;;  %2620 = vmatmul.bf16.gmra.mxu1 %v5370_v8  ;;  %v1722_v9 = vadd.f32 %v5763_v52, %v5815_v46  ;;  %v1778_v51 = vadd.f32 %v1777_v35, %v1749_v4  ;;  %v4157_v52 = vld [vmem:[%s6105_s3 + $0x1d8] sm:$0xff]  ;;  %v4154_v4 = vld [vmem:[%s6105_s3 + $0x1c0] sm:$0xff] }
 0x1c5   :  { %2678 = vmatmul.bf16.gmra.mxu3 %v5631_v10  ;;  %v4132_v10 = vld [vmem:[%s6105_s3 + $0x110] sm:$0xff]  ;;  %2729 = vmatpush.bf16.msrb.mxu1 %v4139_v48 }
 0x1c6   :  { %2649 = vmatmul.bf16.gmra.mxu2 %v5607_v60  ;;  %2699 = vmatpush.bf16.msrb.mxu0 %v4132_v10  ;;  %v1987_v37 = vmax.f32 %v1778_v51, 0.0  ;;  %v5969_v51 = vperm.slane %v5664_v26, 6 }
 0x1c7   :  { %2785 = vmatpush.bf16.msrb.mxu3 %v4157_v52 }
 0x1c8   :  { %v5891_v60 = vpop.f32.mrf.mxu3  ;;  %v1804_v48 = vadd.f32 %v5859_v29, %v5969_v51 }
 0x1c9   :  { %v5889_v8 = vpop.f32.mrf.mxu2  ;;  %v1750_v23 = vpop.f32.mrf.mxu0  ;;  %2730 = vmatpush.bf16.msrb.mxu1 %v4138_v43 }
 0x1ca   :  { %v1751_v41 = vadd.f32 %v1750_v23, %v1722_v9  ;;  %v1779_v55 = vpop.f32.mrf.mxu1  ;;  %2700 = vmatpush.bf16.msrb.mxu0 %v4131_v34  ;;  %v1732_v9 = vadd.f32 %v5817_v42, %v5815_v46  ;;  %v1802_v42 = vadd.f32 %v5841_v49, %v5969_v51  ;;  %v1833_v56 = vadd.f32 %v5861_v45, %v1804_v48 }
 0x1cb   :  { %2786 = vmatpush.bf16.msrb.mxu3 %v4156_v13 }
 0x1cc   :  { %v1780_v24 = vadd.f32 %v1779_v55, %v1751_v41 }
 0x1ce   :  { %v1995_v53 = vmax.f32 %v1780_v24, 0.0  ;;  %2701 = vmatpush.bf16.msrb.mxu0 %v4130_v54 }
 0x1cf   :  { %2787 = vmatpush.bf16.msrb.mxu3 %v4155_v21 }
 0x1d0   :  { %v5913_v1 = vpack.c.bf16 %v1995_v53, %v1987_v37  ;;  %v5915_v40 = vpop.f32.mrf.mxu3  ;;  %v5983_v37 = vperm.slane %v5664_v26, 7  ;;  %v1831_v53 = vadd.f32 %v5843_v11, %v1802_v42 }
 0x1d1   :  { %v5911_v59 = vpop.f32.mrf.mxu2  ;;  %v1753_v16 = vpop.f32.mrf.mxu0 }
 0x1d2   :  { %v1782_v5 = vpop.f32.mrf.mxu1  ;;  %v1754_v44 = vadd.f32 %v1753_v16, %v1725_v18 }
 0x1d3   :  { %2788 = vmatpush.bf16.msrb.mxu3 %v4154_v4 }
 0x1d4   :  { %2596 = vmatmul.bf16.gmra.mxu0 %v5178_v61  ;;  %2625 = vmatmul.bf16.gmra.mxu1 %v5425_v20  ;;  %v1783_v20 = vadd.f32 %v1782_v5, %v1754_v44 }
 0x1d5   :  { %2683 = vmatmul.bf16.gmra.mxu3 %v5646_v47  ;;  %v4146_v47 = vld [vmem:[%s6105_s3 + $0x180] sm:$0xff] }
 0x1d6   :  { %2654 = vmatmul.bf16.gmra.mxu2 %v5634_v63  ;;  %v2003_v31 = vmax.f32 %v1783_v20, 0.0  ;;  %v1807_v20 = vadd.f32 %v5889_v8, %v5969_v51 }
 0x1d7   :  { %2759 = vmatpush.bf16.msrb.mxu2 %v4146_v47 }
 0x1d8   :  { %v5939_v61 = vpop.f32.mrf.mxu3 }
 0x1d9   :  { %v5937_v58 = vpop.f32.mrf.mxu2  ;;  %v1755_v27 = vpop.f32.mrf.mxu0 }
 0x1da   :  { %v1756_v28 = vadd.f32 %v1755_v27, %v1727_v50  ;;  %v1784_v63 = vpop.f32.mrf.mxu1 }
 0x1dc   :  { %v1785_v22 = vadd.f32 %v1784_v63, %v1756_v28 }
 0x1de   :  { %v2011_v32 = vmax.f32 %v1785_v22, 0.0  ;;  %v1809_v22 = vadd.f32 %v5911_v59, %v5969_v51 }
 0x1e0   :  { %v5949_v35 = vpack.c.bf16 %v2011_v32, %v2003_v31  ;;  %v5951_v30 = vpop.f32.mrf.mxu3  ;;  %v1836_v31 = vadd.f32 %v5891_v60, %v1807_v20 }
 0x1e1   :  { %v5947_v19 = vpop.f32.mrf.mxu2  ;;  %v1758_v36 = vpop.f32.mrf.mxu0 }
 0x1e2   :  { %v1787_v2 = vpop.f32.mrf.mxu1  ;;  %v1759_v15 = vadd.f32 %v1758_v36, %v1730_v3  ;;  %v1838_v36 = vadd.f32 %v5915_v40, %v1809_v22 }
 0x1e4   :  { %2601 = vmatmul.bf16.gmra.mxu0 %v5245_v62  ;;  %2630 = vmatmul.bf16.gmra.mxu1 %v5487_v17  ;;  %v1788_v10 = vadd.f32 %v1787_v2, %v1759_v15 }
 0x1e5   :  { %2688 = vmatmul.bf16.gmra.mxu3 %v5689_v0 }
 0x1e6   :  { %2659 = vmatmul.bf16.gmra.mxu2 %v5669_v7  ;;  %v2019_v41 = vmax.f32 %v1788_v10, 0.0 }
 0x1e8   :  { %v5966_v33 = vpop.f32.mrf.mxu3 }
 0x1e9   :  { %v5964_v23 = vpop.f32.mrf.mxu2  ;;  %v1760_v62 = vpop.f32.mrf.mxu0 }
 0x1ea   :  { %v1761_v17 = vadd.f32 %v1760_v62, %v1732_v9  ;;  %v1789_v6 = vpop.f32.mrf.mxu1 }
 0x1ec   :  { %v1790_v7 = vadd.f32 %v1789_v6, %v1761_v17 }
 0x1ee   :  { %v2027_v55 = vmax.f32 %v1790_v7, 0.0 }
 0x1f0   :  { %v5973_v0 = vpack.c.bf16 %v2027_v55, %v2019_v41  ;;  %v5975_v24 = vpop.f32.mrf.mxu3  ;;  %v1812_v55 = vadd.f32 %v5937_v58, %v5969_v51 }
 0x1f1   :  { %v5971_v52 = vpop.f32.mrf.mxu2  ;;  %v1859_v46 = vpop.f32.mrf.mxu0 }
 0x1f2   :  { %v1888_v34 = vpop.f32.mrf.mxu1  ;;  %v1860_v16 = vadd.f32 %v1859_v46, %v1831_v53 }
 0x1f3   :  { %v1889_v43 = vadd.f32 %v1888_v34, %v5983_v37  ;;  %v1814_v34 = vadd.f32 %v5947_v19, %v5969_v51 }
 0x1f4   :  { %2702 = vmatmul.bf16.vlgmr.msrb.gmra.mxu0 %v5719_v12  ;;  %2731 = vmatmul.bf16.vlgmr.msrb.gmra.mxu1 %v5857_v25  ;;  %v1972_v29 = vmax.f32 %v1860_v16, 0.0 }
 0x1f8   :  { %v1946_v49 = vpop.f32.mrf.mxu3 }
 0x1f9   :  { %v1917_v54 = vpop.f32.mrf.mxu2  ;;  %v1861_v5 = vpop.f32.mrf.mxu0 }
 0x1fa   :  { %v1862_v13 = vadd.f32 %v1861_v5, %v1833_v56  ;;  %v1890_v18 = vpop.f32.mrf.mxu1  ;;  %v1918_v12 = vadd.f32 %v1917_v54, %v1889_v43  ;;  %v1841_v56 = vadd.f32 %v5939_v61, %v1812_v55  ;;  %v1843_v54 = vadd.f32 %v5951_v30, %v1814_v34 }
 0x1fb   :  { %v1891_v26 = vadd.f32 %v1890_v18, %v5983_v37 }
 0x1fc   :  { %v1980_v39 = vmax.f32 %v1862_v13, 0.0  ;;  %v1947_v25 = vadd.f32 %v1946_v49, %v1918_v12 }
 0x1fe   :  { %v2036_v44 = vpack.c.bf16 %v1980_v39, %v1972_v29  ;;  %v1973_v21 = vmax.f32 %v1947_v25, 0.0  ;;  %v1817_v25 = vadd.f32 %v5964_v23, %v5969_v51 }
 0x200   :  { %2760 = vmatmul.bf16.vlgmr.msrb.gmra.mxu2 %v2036_v44  ;;  %v1948_v27 = vpop.f32.mrf.mxu3 }
 0x201   :  { %v1919_v50 = vpop.f32.mrf.mxu2  ;;  %v1864_v45 = vpop.f32.mrf.mxu0 }
 0x202   :  { %v1920_v11 = vadd.f32 %v1919_v50, %v1891_v26  ;;  %v1893_v28 = vpop.f32.mrf.mxu1  ;;  %v1865_v2 = vadd.f32 %v1864_v45, %v1836_v31  ;;  %v1819_v45 = vadd.f32 %v5971_v52, %v5969_v51 }
 0x203   :  { %v1894_v8 = vadd.f32 %v1893_v28, %v5983_v37 }
 0x204   :  { %v1949_v63 = vadd.f32 %v1948_v27, %v1920_v11  ;;  %2707 = vmatmul.bf16.gmra.mxu0 %v5781_v57  ;;  %2736 = vmatmul.bf16.gmra.mxu1 %v5913_v1  ;;  %v1988_v62 = vmax.f32 %v1865_v2, 0.0 }
 0x206   :  { %v1981_v47 = vmax.f32 %v1949_v63, 0.0  ;;  %v1846_v63 = vadd.f32 %v5966_v33, %v1817_v25 }
 0x208   :  { %v2037_v32 = vpack.c.bf16 %v1981_v47, %v1973_v21  ;;  %v1951_v4 = vpop.f32.mrf.mxu3  ;;  %v1848_v21 = vadd.f32 %v5975_v24, %v1819_v45 }
 0x209   :  { %v1922_v3 = vpop.f32.mrf.mxu2  ;;  %v1866_v15 = vpop.f32.mrf.mxu0 }
 0x20a   :  { %2789 = vmatmul.bf16.vlgmr.msrb.gmra.mxu3 %v2037_v32  ;;  %v1867_v9 = vadd.f32 %v1866_v15, %v1838_v36  ;;  %v1895_v59 = vpop.f32.mrf.mxu1  ;;  %v1923_v10 = vadd.f32 %v1922_v3, %v1894_v8 }
 0x20b   :  { %v1896_v1 = vadd.f32 %v1895_v59, %v5983_v37 }
 0x20c   :  { %v1996_v57 = vmax.f32 %v1867_v9, 0.0  ;;  %v1952_v60 = vadd.f32 %v1951_v4, %v1923_v10 }
 0x20e   :  { %v2044_v17 = vpack.c.bf16 %v1996_v57, %v1988_v62  ;;  %v1989_v48 = vmax.f32 %v1952_v60, 0.0 }
 0x210   :  { %2765 = vmatmul.bf16.gmra.mxu2 %v2044_v17  ;;  %v1953_v40 = vpop.f32.mrf.mxu3 }
 0x211   :  { %v1924_v6 = vpop.f32.mrf.mxu2  ;;  %v1869_v41 = vpop.f32.mrf.mxu0 }
 0x212   :  { %v1925_v7 = vadd.f32 %v1924_v6, %v1896_v1  ;;  %v1898_v46 = vpop.f32.mrf.mxu1  ;;  %v1870_v43 = vadd.f32 %v1869_v41, %v1841_v56 }
 0x213   :  { %v1899_v58 = vadd.f32 %v1898_v46, %v5983_v37 }
 0x214   :  { %v1954_v42 = vadd.f32 %v1953_v40, %v1925_v7  ;;  %2712 = vmatmul.bf16.gmra.mxu0 %v5793_v14  ;;  %2741 = vmatmul.bf16.gmra.mxu1 %v5949_v35  ;;  %v2004_v29 = vmax.f32 %v1870_v43, 0.0 }
 0x216   :  { %v1997_v53 = vmax.f32 %v1954_v42, 0.0 }
 0x218   :  { %v2045_v16 = vpack.c.bf16 %v1997_v53, %v1989_v48  ;;  %v1956_v5 = vpop.f32.mrf.mxu3 }
 0x219   :  { %v1927_v49 = vpop.f32.mrf.mxu2  ;;  %v1871_v13 = vpop.f32.mrf.mxu0 }
 0x21a   :  { %2794 = vmatmul.bf16.gmra.mxu3 %v2045_v16  ;;  %v1872_v18 = vadd.f32 %v1871_v13, %v1843_v54  ;;  %v1900_v19 = vpop.f32.mrf.mxu1  ;;  %v1928_v39 = vadd.f32 %v1927_v49, %v1899_v58 }
 0x21b   :  { %v1901_v35 = vadd.f32 %v1900_v19, %v5983_v37 }
 0x21c   :  { %v2012_v14 = vmax.f32 %v1872_v18, 0.0  ;;  %v1957_v61 = vadd.f32 %v1956_v5, %v1928_v39 }
 0x21e   :  { %v2052_v12 = vpack.c.bf16 %v2012_v14, %v2004_v29  ;;  %v2005_v20 = vmax.f32 %v1957_v61, 0.0 }
 0x220   :  { %2770 = vmatmul.bf16.gmra.mxu2 %v2052_v12  ;;  %v1958_v30 = vpop.f32.mrf.mxu3 }
 0x221   :  { %v1929_v44 = vpop.f32.mrf.mxu2  ;;  %v1874_v50 = vpop.f32.mrf.mxu0 }
 0x222   :  { %v1930_v26 = vadd.f32 %v1929_v44, %v1901_v35  ;;  %v1903_v11 = vpop.f32.mrf.mxu1  ;;  %v1875_v47 = vadd.f32 %v1874_v50, %v1846_v63  ;;  %v6047_v44 = vld [vmem:[%s6106_s4] ss:$0 sm:$0xff] }
 0x223   :  { %v1904_v23 = vadd.f32 %v1903_v11, %v5983_v37 }
 0x224   :  { %v1959_v27 = vadd.f32 %v1958_v30, %v1930_v26  ;;  %2717 = vmatmul.bf16.gmra.mxu0 %v5830_v38  ;;  %2746 = vmatmul.bf16.gmra.mxu1 %v5973_v0  ;;  %v2020_v52 = vmax.f32 %v1875_v47, 0.0 }
 0x226   :  { %v2013_v28 = vmax.f32 %v1959_v27, 0.0 }
 0x228   :  { %v2053_v22 = vpack.c.bf16 %v2013_v28, %v2005_v20  ;;  %v1961_v32 = vpop.f32.mrf.mxu3 }
 0x229   :  { %v1932_v31 = vpop.f32.mrf.mxu2  ;;  %v1876_v36 = vpop.f32.mrf.mxu0 }
 0x22a   :  { %2799 = vmatmul.bf16.gmra.mxu3 %v2053_v22  ;;  %v1877_v2 = vadd.f32 %v1876_v36, %v1848_v21  ;;  %v1905_v51 = vpop.f32.mrf.mxu1  ;;  %v1933_v3 = vadd.f32 %v1932_v31, %v1904_v23 }
 0x22b   :  { %v1906_v0 = vadd.f32 %v1905_v51, %v5983_v37 }
 0x22c   :  { %v2028_v38 = vmax.f32 %v1877_v2, 0.0  ;;  %v1962_v33 = vadd.f32 %v1961_v32, %v1933_v3 }
 0x22e   :  { %v2060_v8 = vpack.c.bf16 %v2028_v38, %v2020_v52  ;;  %v2021_v57 = vmax.f32 %v1962_v33, 0.0 }
 0x230   :  { %2775 = vmatmul.bf16.gmra.mxu2 %v2060_v8  ;;  %v1963_v9 = vpop.f32.mrf.mxu3 }
 0x231   :  { %v1934_v4 = vpop.f32.mrf.mxu2  ;;  %v2587_v24 = vpop.f32.mrf.mxu0 }
 0x232   :  { %v1935_v15 = vadd.f32 %v1934_v4, %v1906_v0  ;;  %v2616_v59 = vpop.f32.mrf.mxu1  ;;  %v2588_v61 = vadd.f32 %v6047_v44, %v2587_v24 }
 0x234   :  { %v1964_v62 = vadd.f32 %v1963_v9, %v1935_v15  ;;  %v2617_v25 = vadd.f32 %v2616_v59, %v2588_v61 }
 0x236   :  { %v2029_v10 = vmax.f32 %v1964_v62, 0.0 }
 0x238   :  { %v2061_v17 = vpack.c.bf16 %v2029_v10, %v2021_v57  ;;  %v2674_v7 = vpop.f32.mrf.mxu3 }
 0x239   :  { %v2645_v1 = vpop.f32.mrf.mxu2  ;;  %v2589_v6 = vpop.f32.mrf.mxu0 }
 0x23a   :  { %2804 = vmatmul.bf16.gmra.mxu3 %v2061_v17  ;;  %v2618_v60 = vpop.f32.mrf.mxu1  ;;  %v2646_v27 = vadd.f32 %v2645_v1, %v2617_v25  ;;  %v2590_v45 = vadd.f32 %v6047_v44, %v2589_v6 }
 0x23c   :  { %v2675_v20 = vadd.f32 %v2674_v7, %v2646_v27  ;;  %v2619_v21 = vadd.f32 %v2618_v60, %v2590_v45 }
 0x240   :  { %v2676_v37 = vpop.f32.mrf.mxu3 }
 0x241   :  { %v2647_v40 = vpop.f32.mrf.mxu2  ;;  %v2592_v41 = vpop.f32.mrf.mxu0 }
 0x242   :  { %v2621_v55 = vpop.f32.mrf.mxu1  ;;  %v2648_v31 = vadd.f32 %v2647_v40, %v2619_v21  ;;  %v2593_v32 = vadd.f32 %v6047_v44, %v2592_v41 }
 0x244   :  { %v2677_v2 = vadd.f32 %v2676_v37, %v2648_v31  ;;  %v2622_v3 = vadd.f32 %v2621_v55, %v2593_v32 }
 0x248   :  { %v2679_v53 = vpop.f32.mrf.mxu3 }
 0x249   :  { %v2650_v46 = vpop.f32.mrf.mxu2  ;;  %v2594_v42 = vpop.f32.mrf.mxu0 }
 0x24a   :  { %v2623_v34 = vpop.f32.mrf.mxu1  ;;  %v2651_v33 = vadd.f32 %v2650_v46, %v2622_v3  ;;  %v2595_v15 = vadd.f32 %v6047_v44, %v2594_v42 }
 0x24c   :  { %v2680_v59 = vadd.f32 %v2679_v53, %v2651_v33  ;;  %v2624_v17 = vadd.f32 %v2623_v34, %v2595_v15 }
 0x250   :  { %v2681_v49 = vpop.f32.mrf.mxu3 }
 0x251   :  { %v2597_v48 = vpop.f32.mrf.mxu0  ;;  %v2652_v16 = vpop.f32.mrf.mxu2 }
 0x252   :  { %v6020_v56 = vpop.f32.mrf.mxu1  ;;  %v2653_v60 = vadd.f32 %v2652_v16, %v2624_v17  ;;  %v2598_v40 = vadd.f32 %v6047_v44, %v2597_v48 }
 0x254   :  { %v2682_v55 = vadd.f32 %v2681_v49, %v2653_v60 }
 0x258   :  { %v6032_v18 = vpop.f32.mrf.mxu3 }
 0x259   :  { %v6022_v54 = vpop.f32.mrf.mxu0  ;;  %v6026_v58 = vpop.f32.mrf.mxu2 }
 0x25a   :  { %v6024_v43 = vpop.f32.mrf.mxu1  ;;  %v2600_v16 = vadd.f32 %v6047_v44, %v6022_v54 }
 0x260   :  { %v6040_v39 = vpop.f32.mrf.mxu3 }
 0x261   :  { %v6028_v5 = vpop.f32.mrf.mxu0  ;;  %v6034_v19 = vpop.f32.mrf.mxu2 }
 0x262   :  { %v6030_v13 = vpop.f32.mrf.mxu1  ;;  %v2603_v54 = vadd.f32 %v6047_v44, %v6028_v5 }
 0x268   :  { %v6050_v30 = vpop.f32.mrf.mxu3 }
 0x269   :  { %v6036_v29 = vpop.f32.mrf.mxu0  ;;  %v6042_v12 = vpop.f32.mrf.mxu2 }
 0x26a   :  { %v6038_v14 = vpop.f32.mrf.mxu1  ;;  %v2605_v5 = vadd.f32 %v6047_v44, %v6036_v29 }
 0x270   :  { %v6055_v22 = vpop.f32.mrf.mxu3 }
 0x271   :  { %v2703_v35 = vpop.f32.mrf.mxu0  ;;  %v6052_v50 = vpop.f32.mrf.mxu2 }
 0x272   :  { %v2732_v26 = vpop.f32.mrf.mxu1  ;;  %v2704_v47 = vadd.f32 %v2703_v35, %v2675_v20  ;;  %v2627_v35 = vadd.f32 %v6020_v56, %v2598_v40  ;;  %v2629_v56 = vadd.f32 %v6024_v43, %v2600_v16  ;;  %v2632_v43 = vadd.f32 %v6030_v13, %v2603_v54 }
 0x274   :  { %v2733_v36 = vadd.f32 %v2732_v26, %v2704_v47  ;;  %v2656_v26 = vadd.f32 %v6026_v58, %v2627_v35  ;;  %v2658_v58 = vadd.f32 %v6034_v19, %v2629_v56  ;;  %v2661_v19 = vadd.f32 %v6042_v12, %v2632_v43 }
 0x276   :  { %v2685_v49 = vadd.f32 %v6032_v18, %v2656_v26  ;;  %v2687_v18 = vadd.f32 %v6040_v39, %v2658_v58  ;;  %v2690_v39 = vadd.f32 %v6050_v30, %v2661_v19 }
 0x279   :  { %v2705_v11 = vpop.f32.mrf.mxu0 }
 0x27a   :  { %v2734_v28 = vpop.f32.mrf.mxu1  ;;  %v2706_v8 = vadd.f32 %v2705_v11, %v2677_v2 }
 0x27c   :  { %v2735_v24 = vadd.f32 %v2734_v28, %v2706_v8  ;;  %v2634_v8 = vadd.f32 %v6038_v14, %v2605_v5 }
 0x27e   :  { %v2663_v12 = vadd.f32 %v6052_v50, %v2634_v8 }
 0x280   :  { %v2692_v29 = vadd.f32 %v6055_v22, %v2663_v12 }
 0x281   :  { %v2708_v23 = vpop.f32.mrf.mxu0 }
 0x282   :  { %v2737_v0 = vpop.f32.mrf.mxu1  ;;  %v2709_v1 = vadd.f32 %v2708_v23, %v2680_v59 }
 0x283   :  { %v2761_v63 = vpop.f32.mrf.mxu2 }
 0x284   :  { %v2762_v51 = vadd.f32 %v2761_v63, %v2733_v36  ;;  %v2738_v41 = vadd.f32 %v2737_v0, %v2709_v1 }
 0x289   :  { %v2710_v9 = vpop.f32.mrf.mxu0 }
 0x28a   :  { %v2739_v7 = vpop.f32.mrf.mxu1  ;;  %v2711_v61 = vadd.f32 %v2710_v9, %v2682_v55 }
 0x28b   :  { %v2763_v52 = vpop.f32.mrf.mxu2 }
 0x28c   :  { %v2764_v62 = vadd.f32 %v2763_v52, %v2735_v24  ;;  %v2740_v48 = vadd.f32 %v2739_v7, %v2711_v61 }
 0x28d   :  { %v2790_v38 = vpop.f32.mrf.mxu3 }
 0x28e   :  { %v2791_v4 = vadd.f32 %v2790_v38, %v2762_v51 }
 0x290   :  { %2810 = vst [vmem:[%s6107_s5] sm:$0xff] %v2791_v4 }
 0x291   :  { %v2713_v42 = vpop.f32.mrf.mxu0 }
 0x292   :  { %v2742_v25 = vpop.f32.mrf.mxu1  ;;  %v2714_v20 = vadd.f32 %v2713_v42, %v2685_v49 }
 0x293   :  { %v2766_v57 = vpop.f32.mrf.mxu2 }
 0x294   :  { %v2767_v37 = vadd.f32 %v2766_v57, %v2738_v41  ;;  %v2743_v21 = vadd.f32 %v2742_v25, %v2714_v20 }
 0x295   :  { %v2792_v10 = vpop.f32.mrf.mxu3 }
 0x296   :  { %v2793_v6 = vadd.f32 %v2792_v10, %v2764_v62 }
 0x298   :  { %2811 = vst [vmem:[%s6107_s5 + $0x8] sm:$0xff] %v2793_v6 }
 0x299   :  { %v2715_v63 = vpop.f32.mrf.mxu0 }
 0x29a   :  { %v2744_v47 = vpop.f32.mrf.mxu1  ;;  %v2716_v36 = vadd.f32 %v2715_v63, %v2687_v18 }
 0x29b   :  { %v2768_v46 = vpop.f32.mrf.mxu2 }
 0x29c   :  { %v2769_v11 = vadd.f32 %v2768_v46, %v2740_v48  ;;  %v2745_v52 = vadd.f32 %v2744_v47, %v2716_v36 }
 0x29d   :  { %v2795_v53 = vpop.f32.mrf.mxu3 }
 0x29e   :  { %v2796_v34 = vadd.f32 %v2795_v53, %v2767_v37 }
 0x2a0   :  { %2812 = vst [vmem:[%s6107_s5 + $0x10] sm:$0xff] %v2796_v34 }
 0x2a1   :  { %v2718_v51 = vpop.f32.mrf.mxu0 }
 0x2a2   :  { %v2719_v13 = vadd.f32 %v2718_v51, %v2690_v39  ;;  %v2747_v4 = vpop.f32.mrf.mxu1 }
 0x2a3   :  { %v2771_v27 = vpop.f32.mrf.mxu2 }
 0x2a4   :  { %v2772_v31 = vadd.f32 %v2771_v27, %v2743_v21  ;;  %v2748_v15 = vadd.f32 %v2747_v4, %v2719_v13 }
 0x2a5   :  { %v2797_v45 = vpop.f32.mrf.mxu3 }
 0x2a6   :  { %v2798_v28 = vadd.f32 %v2797_v45, %v2769_v11 }
 0x2a8   :  { %2813 = vst [vmem:[%s6107_s5 + $0x18] sm:$0xff] %v2798_v28 }
 0x2a9   :  { %v2720_v24 = vpop.f32.mrf.mxu0 }
 0x2aa   :  { %v2721_v9 = vadd.f32 %v2720_v24, %v2692_v29  ;;  %v2749_v14 = vpop.f32.mrf.mxu1 }
 0x2ab   :  { %v2773_v23 = vpop.f32.mrf.mxu2 }
 0x2ac   :  { %v2774_v38 = vadd.f32 %v2773_v23, %v2745_v52  ;;  %v2750_v57 = vadd.f32 %v2749_v14, %v2721_v9 }
 0x2ad   :  { %v2800_v32 = vpop.f32.mrf.mxu3 }
 0x2ae   :  { %v2801_v2 = vadd.f32 %v2800_v32, %v2772_v31 }
 0x2b0   :  { %2814 = vst [vmem:[%s6107_s5 + $0x20] sm:$0xff] %v2801_v2 }
 0x2b3   :  { %v2776_v33 = vpop.f32.mrf.mxu2 }
 0x2b4   :  { %v2777_v44 = vadd.f32 %v2776_v33, %v2748_v15 }
 0x2b5   :  { %v2802_v3 = vpop.f32.mrf.mxu3 }
 0x2b6   :  { %v2803_v0 = vadd.f32 %v2802_v3, %v2774_v38 }
 0x2b8   :  { %2815 = vst [vmem:[%s6107_s5 + $0x28] sm:$0xff] %v2803_v0 }
 0x2bb   :  { %v2778_v62 = vpop.f32.mrf.mxu2 }
 0x2bc   :  { %v2779_v50 = vadd.f32 %v2778_v62, %v2750_v57 }
 0x2bd   :  { %v2805_v30 = vpop.f32.mrf.mxu3 }
 0x2be   :  { %v2806_v59 = vadd.f32 %v2805_v30, %v2777_v44 }
 0x2c0   :  { %2816 = vst [vmem:[%s6107_s5 + $0x30] sm:$0xff] %v2806_v59 }
 0x2c5   :  { %v2807_v10 = vpop.f32.mrf.mxu3 }
 0x2c6   :  { %v2808_v17 = vadd.f32 %v2807_v10, %v2779_v50 }
 0x2c8   :  { %2817 = vst [vmem:[%s6107_s5 + $0x38] sm:$0xff] %v2808_v17 }

</bundles_post_ra>
